<compile_context>
chip_gen: v7x
topology: tpu7x:2x2x1
jax: 0.10.0
libtpu: 0.0.40
codegen_flags: <defaults>
</compile_context>

<pallas_src>
import jax
import jax.numpy as jnp
from jax import lax
from jax.experimental import pallas as pl
from jax.experimental.pallas import tpu as pltpu


def _make_self_attention_kernel(heads: int, seq: int, dim: int, compute_dtype):
    head_dim = dim // heads

    def kernel(x_ref, wqkv_ref, wo3_ref, bo_ref, o_ref):
        x = x_ref[0]                                        # (N, D) compute_dtype

        # Fused QKV projection: (N, D) @ (D, 3D) -> (N, 3D), f32 accumulation.
        # The D**-0.5 scale is already folded into the Q columns of wqkv.
        qkv = jnp.dot(x, wqkv_ref[...], preferred_element_type=jnp.float32)

        acc = jnp.zeros((seq, dim), jnp.float32)            # output-projection accumulator
        for h in range(heads):
            lo = h * head_dim
            qh = qkv[:, lo:lo + head_dim].astype(compute_dtype)                    # (N, Dh)
            kh = qkv[:, dim + lo:dim + lo + head_dim].astype(compute_dtype)        # (N, Dh)
            vh = qkv[:, 2 * dim + lo:2 * dim + lo + head_dim].astype(compute_dtype)

            # q @ k^T without materialising a transpose: contract last dims.
            s = lax.dot_general(
                qh, kh,
                dimension_numbers=(((1,), (1,)), ((), ())),
                preferred_element_type=jnp.float32)                                # (N, N)

            # Numerically-stable softmax in f32; the divide goes to the EUP.
            s = s - jnp.max(s, axis=-1, keepdims=True)
            p = jnp.exp(s)
            p = p * pl.reciprocal(jnp.sum(p, axis=-1, keepdims=True), approx=True)

            head_out = jnp.dot(p.astype(compute_dtype), vh,
                               preferred_element_type=jnp.float32)                 # (N, Dh)

            # Project this head straight into the output and accumulate.
            # wo3_ref[h] is a free leading-axis (Dh, D) slice -> lane-dense output.
            acc = acc + jnp.dot(head_out.astype(compute_dtype), wo3_ref[h],
                                preferred_element_type=jnp.float32)                # (N, D)

        o_ref[0] = (acc + bo_ref[...]).astype(o_ref.dtype)

    return kernel


def self_attention_pallas(x, wq, wk, wv, wo, bo, *, heads,
                          compute_dtype=jnp.bfloat16,
                          single_buffer_weights=True):
    """x: (B, N, D). wq/wk/wv/wo: (D, D) in PyTorch Linear layout (out, in). bo: (D,).
    Returns (B, N, D) in x.dtype, matching the PyTorch module forward."""
    B, N, D = x.shape
    assert D % heads == 0, "embedding dim must be divisible by heads"
    Dh = D // heads
    out_dtype = x.dtype
    f32 = jnp.float32
    # PyTorch module intentionally uses dim**-0.5 (NOT head_dim**-0.5) — keep it.
    scale = float(D) ** (-0.5)

    # Fused QKV weight (D, 3D), scale folded into the Q block; cast for the MXU.
    wqkv_t = jnp.concatenate(
        [wq.T.astype(f32) * scale, wk.T.astype(f32), wv.T.astype(f32)],
        axis=1).astype(compute_dtype)
    # Output projection reshaped so each head's slice is a leading-axis index.
    wo3 = wo.T.astype(f32).reshape(heads, Dh, D).astype(compute_dtype)
    bo_2d = bo.reshape(1, D).astype(f32)
    x_c = x.astype(compute_dtype)

    kernel = _make_self_attention_kernel(heads, N, D, compute_dtype)

    def _const_spec(shape):
        index_map = lambda b: (0,) * len(shape)
        if single_buffer_weights:
            # These blocks never change across the grid -> single buffer halves
            # their VMEM footprint (matters at real ViT sizes, esp. v7x 64 MiB).
            return pl.BlockSpec(shape, index_map, pipeline_mode=pl.Buffered(1))
        return pl.BlockSpec(shape, index_map)

    in_specs = [
        pl.BlockSpec((1, N, D), lambda b: (b, 0, 0)),    # x: one batch element per step
        _const_spec((D, 3 * D)),                         # fused (scaled-Q | K | V) weight
        _const_spec((heads, Dh, D)),                     # Wo^T as (H, Dh, D)
        _const_spec((1, D)),                             # output bias
    ]

    # Rough VMEM footprint -> scoped limit with ~2x headroom (clamped).
    itm = jnp.dtype(compute_dtype).itemsize
    out_itm = jnp.dtype(out_dtype).itemsize
    n_wbuf = 1 if single_buffer_weights else 2
    footprint = (
        2 * N * D * itm                       # x block (double-buffered)
        + 2 * N * D * out_itm                 # out block (double-buffered)
        + n_wbuf * (3 * D * D + D * D) * itm  # fused QKV + Wo weights
        + D * 4                               # bias
        + (3 * N * D + 2 * N * N + 2 * N * D) * 4)   # qkv, scores/probs, acc/head_out (f32)
    vmem_limit = int(min(max(2 * footprint, 8 << 20), 60 << 20))

    flops = 2 * B * (N * D * 3 * D + 2 * heads * N * N * Dh + N * D * D)
    cost = pl.CostEstimate(
        flops=flops,
        transcendentals=B * heads * N * N,   # exp in the softmax
        bytes_accessed=(x_c.size * itm + wqkv_t.size * itm + wo3.size * itm
                        + bo_2d.size * 4 + B * N * D * out_itm))

    return pl.pallas_call(
        kernel,
        out_shape=jax.ShapeDtypeStruct((B, N, D), out_dtype),
        grid_spec=pltpu.PrefetchScalarGridSpec(
            num_scalar_prefetch=0,
            grid=(B,),
            in_specs=in_specs,
            out_specs=pl.BlockSpec((1, N, D), lambda b: (b, 0, 0)),
        ),
        compiler_params=pltpu.CompilerParams(
            dimension_semantics=("parallel",),
            vmem_limit_bytes=vmem_limit,
        ),
        cost_estimate=cost,
    )(x_c, wqkv_t, wo3, bo_2d)


def self_attention_ref(x, wq, wk, wv, wo, bo, *, heads):
    """Pure-JAX f32 reference mirroring the PyTorch forward exactly."""
    B, N, D = x.shape
    H = heads
    Dh = D // H
    scale = float(D) ** (-0.5)
    q = (x @ wq.T).reshape(B, N, H, Dh).transpose(0, 2, 1, 3)
    k = (x @ wk.T).reshape(B, N, H, Dh).transpose(0, 2, 1, 3)
    v = (x @ wv.T).reshape(B, N, H, Dh).transpose(0, 2, 1, 3)
    s = jnp.einsum("bhqd,bhkd->bhqk", q, k) * scale
    p = jax.nn.softmax(s, axis=-1)
    o = jnp.einsum("bhqk,bhkd->bhqd", p, v)
    o = o.transpose(0, 2, 1, 3).reshape(B, N, D)
    return o @ wo.T + bo


if __name__ == "__main__":
    B, N, D, H = 2, 8, 32, 8

    key = jax.random.PRNGKey(0)
    kx, kq, kk, kv, ko, kb = jax.random.split(key, 6)

    x = jax.random.normal(kx, (B, N, D), dtype=jnp.float32)
    # "Linear" weights in PyTorch layout: (out_features, in_features).
    wq = jax.random.normal(kq, (D, D), dtype=jnp.float32) * (D ** -0.5)
    wk = jax.random.normal(kk, (D, D), dtype=jnp.float32) * (D ** -0.5)
    wv = jax.random.normal(kv, (D, D), dtype=jnp.float32) * (D ** -0.5)
    wo = jax.random.normal(ko, (D, D), dtype=jnp.float32) * (D ** -0.5)
    bo = jax.random.normal(kb, (D,), dtype=jnp.float32) * 0.01

    ref = self_attention_ref(x, wq, wk, wv, wo, bo, heads=H)

    def run(compute_dtype, single_buffer):
        out = self_attention_pallas(x, wq, wk, wv, wo, bo, heads=H,
                                    compute_dtype=compute_dtype,
                                    single_buffer_weights=single_buffer)
        return jax.block_until_ready(out)

    # f32 MXU path first: near-exact vs the pure-JAX reference.
    single_buffer = True
    try:
        out_f32 = run(jnp.float32, single_buffer)
    except Exception:
        # Graceful fallback for JAX builds without BlockSpec(pipeline_mode=Buffered(1)).
        single_buffer = False
        out_f32 = run(jnp.float32, single_buffer)
    assert out_f32.shape == (B, N, D)
    assert jnp.allclose(out_f32, ref, atol=5e-3, rtol=5e-3), "f32 mismatch vs reference"

    # Default bf16-MXU path (f32 accumulation + f32 softmax): loosened tolerance.
    out_bf16 = run(jnp.bfloat16, single_buffer)
    assert out_bf16.shape == (B, N, D)
    assert out_bf16.dtype == x.dtype
    assert jnp.allclose(out_bf16, ref, atol=5e-2, rtol=5e-2), "bf16 mismatch vs reference"

    print("KERNEL_OK")
</pallas_src>

<mosaic_0001>
module attributes {stable_mosaic.version = 11 : i64} {
  func.func @kernel(%arg0: i32, %arg1: memref<1x8x32xf32, #tpu.memory_space<vmem>>, %arg2: memref<32x96xf32, #tpu.memory_space<vmem>>, %arg3: memref<8x4x32xf32, #tpu.memory_space<vmem>>, %arg4: memref<1x32xf32, #tpu.memory_space<vmem>>, %arg5: memref<1x8x32xf32, #tpu.memory_space<vmem>>) attributes {dimension_semantics = [#tpu.dimension_semantics<parallel>], iteration_bounds = array<i64: 2>, scalar_prefetch = 0 : i64, scratch_operands = 0 : i64, tpu.core_type = #tpu.core_type<tc>, window_params = [{transform_indices = @transform_0, window_bounds = array<i64: 1, 8, 32>}, {pipeline_mode = #tpu.pipeline_mode<synchronous>, transform_indices = @transform_1, window_bounds = array<i64: 32, 96>}, {pipeline_mode = #tpu.pipeline_mode<synchronous>, transform_indices = @transform_2, window_bounds = array<i64: 8, 4, 32>}, {pipeline_mode = #tpu.pipeline_mode<synchronous>, transform_indices = @transform_3, window_bounds = array<i64: 1, 32>}, {transform_indices = @transform_4, window_bounds = array<i64: 1, 8, 32>}]} {
    %c0 = arith.constant 0 : index
    %c0_0 = arith.constant 0 : index
    %c0_1 = arith.constant 0 : index
    %0 = vector.load %arg1[%c0, %c0_0, %c0_1] : memref<1x8x32xf32, #tpu.memory_space<vmem>>, vector<1x8x32xf32>
    %1 = vector.shape_cast %0 : vector<1x8x32xf32> to vector<8x32xf32>
    %c0_2 = arith.constant 0 : index
    %c0_3 = arith.constant 0 : index
    %2 = vector.load %arg2[%c0_2, %c0_3] : memref<32x96xf32, #tpu.memory_space<vmem>>, vector<32x96xf32>
    %cst = arith.constant dense<0.000000e+00> : vector<8x96xf32>
    %3 = tpu.matmul %1, %2, %cst {dimension_numbers = #tpu.dot_dimension_numbers<[1], [0], [0], [1], [0, 0, 1, 1], [], []>} : vector<8x32xf32>, vector<32x96xf32>, vector<8x96xf32> -> vector<8x96xf32>
    %cst_4 = arith.constant 0.000000e+00 : f32
    %4 = vector.broadcast %cst_4 : f32 to vector<8x32xf32>
    %5 = vector.extract_strided_slice %3 {offsets = [0, 0], sizes = [8, 4], strides = [1, 1]} : vector<8x96xf32> to vector<8x4xf32>
    %6 = vector.extract_strided_slice %3 {offsets = [0, 32], sizes = [8, 4], strides = [1, 1]} : vector<8x96xf32> to vector<8x4xf32>
    %7 = vector.extract_strided_slice %3 {offsets = [0, 64], sizes = [8, 4], strides = [1, 1]} : vector<8x96xf32> to vector<8x4xf32>
    %cst_5 = arith.constant dense<0.000000e+00> : vector<8x8xf32>
    %8 = tpu.matmul %5, %6, %cst_5 {dimension_numbers = #tpu.dot_dimension_numbers<[1], [1], [0], [0], [0, 0, 1, 0], [], []>} : vector<8x4xf32>, vector<8x4xf32>, vector<8x8xf32> -> vector<8x8xf32>
    %cst_6 = arith.constant dense<0xFF800000> : vector<8xf32>
    %9 = vector.multi_reduction <maximumf>, %8, %cst_6 [1] : vector<8x8xf32> to vector<8xf32>
    %10 = vector.shape_cast %9 : vector<8xf32> to vector<8x1xf32>
    %11 = vector.broadcast %10 : vector<8x1xf32> to vector<8x8xf32>
    %12 = arith.subf %8, %11 : vector<8x8xf32>
    %13 = math.exp %12 : vector<8x8xf32>
    %cst_7 = arith.constant dense<0.000000e+00> : vector<8xf32>
    %14 = vector.multi_reduction <add>, %13, %cst_7 [1] : vector<8x8xf32> to vector<8xf32>
    %15 = vector.shape_cast %14 : vector<8xf32> to vector<8x1xf32>
    %16 = tpu.reciprocal %15 {approx = true} : vector<8x1xf32> -> vector<8x1xf32>
    %17 = vector.broadcast %16 : vector<8x1xf32> to vector<8x8xf32>
    %18 = arith.mulf %13, %17 : vector<8x8xf32>
    %cst_8 = arith.constant dense<0.000000e+00> : vector<8x4xf32>
    %19 = tpu.matmul %18, %7, %cst_8 {dimension_numbers = #tpu.dot_dimension_numbers<[1], [0], [0], [1], [0, 0, 1, 1], [], []>} : vector<8x8xf32>, vector<8x4xf32>, vector<8x4xf32> -> vector<8x4xf32>
    %c0_9 = arith.constant 0 : index
    %c0_10 = arith.constant 0 : index
    %c0_11 = arith.constant 0 : index
    %20 = vector.load %arg3[%c0_9, %c0_10, %c0_11] : memref<8x4x32xf32, #tpu.memory_space<vmem>>, vector<1x4x32xf32>
    %21 = vector.shape_cast %20 : vector<1x4x32xf32> to vector<4x32xf32>
    %cst_12 = arith.constant dense<0.000000e+00> : vector<8x32xf32>
    %22 = tpu.matmul %19, %21, %cst_12 {dimension_numbers = #tpu.dot_dimension_numbers<[1], [0], [0], [1], [0, 0, 1, 1], [], []>} : vector<8x4xf32>, vector<4x32xf32>, vector<8x32xf32> -> vector<8x32xf32>
    %23 = arith.addf %4, %22 : vector<8x32xf32>
    %24 = vector.extract_strided_slice %3 {offsets = [0, 4], sizes = [8, 4], strides = [1, 1]} : vector<8x96xf32> to vector<8x4xf32>
    %25 = vector.extract_strided_slice %3 {offsets = [0, 36], sizes = [8, 4], strides = [1, 1]} : vector<8x96xf32> to vector<8x4xf32>
    %26 = vector.extract_strided_slice %3 {offsets = [0, 68], sizes = [8, 4], strides = [1, 1]} : vector<8x96xf32> to vector<8x4xf32>
    %cst_13 = arith.constant dense<0.000000e+00> : vector<8x8xf32>
    %27 = tpu.matmul %24, %25, %cst_13 {dimension_numbers = #tpu.dot_dimension_numbers<[1], [1], [0], [0], [0, 0, 1, 0], [], []>} : vector<8x4xf32>, vector<8x4xf32>, vector<8x8xf32> -> vector<8x8xf32>
    %cst_14 = arith.constant dense<0xFF800000> : vector<8xf32>
    %28 = vector.multi_reduction <maximumf>, %27, %cst_14 [1] : vector<8x8xf32> to vector<8xf32>
    %29 = vector.shape_cast %28 : vector<8xf32> to vector<8x1xf32>
    %30 = vector.broadcast %29 : vector<8x1xf32> to vector<8x8xf32>
    %31 = arith.subf %27, %30 : vector<8x8xf32>
    %32 = math.exp %31 : vector<8x8xf32>
    %cst_15 = arith.constant dense<0.000000e+00> : vector<8xf32>
    %33 = vector.multi_reduction <add>, %32, %cst_15 [1] : vector<8x8xf32> to vector<8xf32>
    %34 = vector.shape_cast %33 : vector<8xf32> to vector<8x1xf32>
    %35 = tpu.reciprocal %34 {approx = true} : vector<8x1xf32> -> vector<8x1xf32>
    %36 = vector.broadcast %35 : vector<8x1xf32> to vector<8x8xf32>
    %37 = arith.mulf %32, %36 : vector<8x8xf32>
    %cst_16 = arith.constant dense<0.000000e+00> : vector<8x4xf32>
    %38 = tpu.matmul %37, %26, %cst_16 {dimension_numbers = #tpu.dot_dimension_numbers<[1], [0], [0], [1], [0, 0, 1, 1], [], []>} : vector<8x8xf32>, vector<8x4xf32>, vector<8x4xf32> -> vector<8x4xf32>
    %c1 = arith.constant 1 : index
    %c0_17 = arith.constant 0 : index
    %c0_18 = arith.constant 0 : index
    %39 = vector.load %arg3[%c1, %c0_17, %c0_18] : memref<8x4x32xf32, #tpu.memory_space<vmem>>, vector<1x4x32xf32>
    %40 = vector.shape_cast %39 : vector<1x4x32xf32> to vector<4x32xf32>
    %cst_19 = arith.constant dense<0.000000e+00> : vector<8x32xf32>
    %41 = tpu.matmul %38, %40, %cst_19 {dimension_numbers = #tpu.dot_dimension_numbers<[1], [0], [0], [1], [0, 0, 1, 1], [], []>} : vector<8x4xf32>, vector<4x32xf32>, vector<8x32xf32> -> vector<8x32xf32>
    %42 = arith.addf %23, %41 : vector<8x32xf32>
    %43 = vector.extract_strided_slice %3 {offsets = [0, 8], sizes = [8, 4], strides = [1, 1]} : vector<8x96xf32> to vector<8x4xf32>
    %44 = vector.extract_strided_slice %3 {offsets = [0, 40], sizes = [8, 4], strides = [1, 1]} : vector<8x96xf32> to vector<8x4xf32>
    %45 = vector.extract_strided_slice %3 {offsets = [0, 72], sizes = [8, 4], strides = [1, 1]} : vector<8x96xf32> to vector<8x4xf32>
    %cst_20 = arith.constant dense<0.000000e+00> : vector<8x8xf32>
    %46 = tpu.matmul %43, %44, %cst_20 {dimension_numbers = #tpu.dot_dimension_numbers<[1], [1], [0], [0], [0, 0, 1, 0], [], []>} : vector<8x4xf32>, vector<8x4xf32>, vector<8x8xf32> -> vector<8x8xf32>
    %cst_21 = arith.constant dense<0xFF800000> : vector<8xf32>
    %47 = vector.multi_reduction <maximumf>, %46, %cst_21 [1] : vector<8x8xf32> to vector<8xf32>
    %48 = vector.shape_cast %47 : vector<8xf32> to vector<8x1xf32>
    %49 = vector.broadcast %48 : vector<8x1xf32> to vector<8x8xf32>
    %50 = arith.subf %46, %49 : vector<8x8xf32>
    %51 = math.exp %50 : vector<8x8xf32>
    %cst_22 = arith.constant dense<0.000000e+00> : vector<8xf32>
    %52 = vector.multi_reduction <add>, %51, %cst_22 [1] : vector<8x8xf32> to vector<8xf32>
    %53 = vector.shape_cast %52 : vector<8xf32> to vector<8x1xf32>
    %54 = tpu.reciprocal %53 {approx = true} : vector<8x1xf32> -> vector<8x1xf32>
    %55 = vector.broadcast %54 : vector<8x1xf32> to vector<8x8xf32>
    %56 = arith.mulf %51, %55 : vector<8x8xf32>
    %cst_23 = arith.constant dense<0.000000e+00> : vector<8x4xf32>
    %57 = tpu.matmul %56, %45, %cst_23 {dimension_numbers = #tpu.dot_dimension_numbers<[1], [0], [0], [1], [0, 0, 1, 1], [], []>} : vector<8x8xf32>, vector<8x4xf32>, vector<8x4xf32> -> vector<8x4xf32>
    %c2 = arith.constant 2 : index
    %c0_24 = arith.constant 0 : index
    %c0_25 = arith.constant 0 : index
    %58 = vector.load %arg3[%c2, %c0_24, %c0_25] : memref<8x4x32xf32, #tpu.memory_space<vmem>>, vector<1x4x32xf32>
    %59 = vector.shape_cast %58 : vector<1x4x32xf32> to vector<4x32xf32>
    %cst_26 = arith.constant dense<0.000000e+00> : vector<8x32xf32>
    %60 = tpu.matmul %57, %59, %cst_26 {dimension_numbers = #tpu.dot_dimension_numbers<[1], [0], [0], [1], [0, 0, 1, 1], [], []>} : vector<8x4xf32>, vector<4x32xf32>, vector<8x32xf32> -> vector<8x32xf32>
    %61 = arith.addf %42, %60 : vector<8x32xf32>
    %62 = vector.extract_strided_slice %3 {offsets = [0, 12], sizes = [8, 4], strides = [1, 1]} : vector<8x96xf32> to vector<8x4xf32>
    %63 = vector.extract_strided_slice %3 {offsets = [0, 44], sizes = [8, 4], strides = [1, 1]} : vector<8x96xf32> to vector<8x4xf32>
    %64 = vector.extract_strided_slice %3 {offsets = [0, 76], sizes = [8, 4], strides = [1, 1]} : vector<8x96xf32> to vector<8x4xf32>
    %cst_27 = arith.constant dense<0.000000e+00> : vector<8x8xf32>
    %65 = tpu.matmul %62, %63, %cst_27 {dimension_numbers = #tpu.dot_dimension_numbers<[1], [1], [0], [0], [0, 0, 1, 0], [], []>} : vector<8x4xf32>, vector<8x4xf32>, vector<8x8xf32> -> vector<8x8xf32>
    %cst_28 = arith.constant dense<0xFF800000> : vector<8xf32>
    %66 = vector.multi_reduction <maximumf>, %65, %cst_28 [1] : vector<8x8xf32> to vector<8xf32>
    %67 = vector.shape_cast %66 : vector<8xf32> to vector<8x1xf32>
    %68 = vector.broadcast %67 : vector<8x1xf32> to vector<8x8xf32>
    %69 = arith.subf %65, %68 : vector<8x8xf32>
    %70 = math.exp %69 : vector<8x8xf32>
    %cst_29 = arith.constant dense<0.000000e+00> : vector<8xf32>
    %71 = vector.multi_reduction <add>, %70, %cst_29 [1] : vector<8x8xf32> to vector<8xf32>
    %72 = vector.shape_cast %71 : vector<8xf32> to vector<8x1xf32>
    %73 = tpu.reciprocal %72 {approx = true} : vector<8x1xf32> -> vector<8x1xf32>
    %74 = vector.broadcast %73 : vector<8x1xf32> to vector<8x8xf32>
    %75 = arith.mulf %70, %74 : vector<8x8xf32>
    %cst_30 = arith.constant dense<0.000000e+00> : vector<8x4xf32>
    %76 = tpu.matmul %75, %64, %cst_30 {dimension_numbers = #tpu.dot_dimension_numbers<[1], [0], [0], [1], [0, 0, 1, 1], [], []>} : vector<8x8xf32>, vector<8x4xf32>, vector<8x4xf32> -> vector<8x4xf32>
    %c3 = arith.constant 3 : index
    %c0_31 = arith.constant 0 : index
    %c0_32 = arith.constant 0 : index
    %77 = vector.load %arg3[%c3, %c0_31, %c0_32] : memref<8x4x32xf32, #tpu.memory_space<vmem>>, vector<1x4x32xf32>
    %78 = vector.shape_cast %77 : vector<1x4x32xf32> to vector<4x32xf32>
    %cst_33 = arith.constant dense<0.000000e+00> : vector<8x32xf32>
    %79 = tpu.matmul %76, %78, %cst_33 {dimension_numbers = #tpu.dot_dimension_numbers<[1], [0], [0], [1], [0, 0, 1, 1], [], []>} : vector<8x4xf32>, vector<4x32xf32>, vector<8x32xf32> -> vector<8x32xf32>
    %80 = arith.addf %61, %79 : vector<8x32xf32>
    %81 = vector.extract_strided_slice %3 {offsets = [0, 16], sizes = [8, 4], strides = [1, 1]} : vector<8x96xf32> to vector<8x4xf32>
    %82 = vector.extract_strided_slice %3 {offsets = [0, 48], sizes = [8, 4], strides = [1, 1]} : vector<8x96xf32> to vector<8x4xf32>
    %83 = vector.extract_strided_slice %3 {offsets = [0, 80], sizes = [8, 4], strides = [1, 1]} : vector<8x96xf32> to vector<8x4xf32>
    %cst_34 = arith.constant dense<0.000000e+00> : vector<8x8xf32>
    %84 = tpu.matmul %81, %82, %cst_34 {dimension_numbers = #tpu.dot_dimension_numbers<[1], [1], [0], [0], [0, 0, 1, 0], [], []>} : vector<8x4xf32>, vector<8x4xf32>, vector<8x8xf32> -> vector<8x8xf32>
    %cst_35 = arith.constant dense<0xFF800000> : vector<8xf32>
    %85 = vector.multi_reduction <maximumf>, %84, %cst_35 [1] : vector<8x8xf32> to vector<8xf32>
    %86 = vector.shape_cast %85 : vector<8xf32> to vector<8x1xf32>
    %87 = vector.broadcast %86 : vector<8x1xf32> to vector<8x8xf32>
    %88 = arith.subf %84, %87 : vector<8x8xf32>
    %89 = math.exp %88 : vector<8x8xf32>
    %cst_36 = arith.constant dense<0.000000e+00> : vector<8xf32>
    %90 = vector.multi_reduction <add>, %89, %cst_36 [1] : vector<8x8xf32> to vector<8xf32>
    %91 = vector.shape_cast %90 : vector<8xf32> to vector<8x1xf32>
    %92 = tpu.reciprocal %91 {approx = true} : vector<8x1xf32> -> vector<8x1xf32>
    %93 = vector.broadcast %92 : vector<8x1xf32> to vector<8x8xf32>
    %94 = arith.mulf %89, %93 : vector<8x8xf32>
    %cst_37 = arith.constant dense<0.000000e+00> : vector<8x4xf32>
    %95 = tpu.matmul %94, %83, %cst_37 {dimension_numbers = #tpu.dot_dimension_numbers<[1], [0], [0], [1], [0, 0, 1, 1], [], []>} : vector<8x8xf32>, vector<8x4xf32>, vector<8x4xf32> -> vector<8x4xf32>
    %c4 = arith.constant 4 : index
    %c0_38 = arith.constant 0 : index
    %c0_39 = arith.constant 0 : index
    %96 = vector.load %arg3[%c4, %c0_38, %c0_39] : memref<8x4x32xf32, #tpu.memory_space<vmem>>, vector<1x4x32xf32>
    %97 = vector.shape_cast %96 : vector<1x4x32xf32> to vector<4x32xf32>
    %cst_40 = arith.constant dense<0.000000e+00> : vector<8x32xf32>
    %98 = tpu.matmul %95, %97, %cst_40 {dimension_numbers = #tpu.dot_dimension_numbers<[1], [0], [0], [1], [0, 0, 1, 1], [], []>} : vector<8x4xf32>, vector<4x32xf32>, vector<8x32xf32> -> vector<8x32xf32>
    %99 = arith.addf %80, %98 : vector<8x32xf32>
    %100 = vector.extract_strided_slice %3 {offsets = [0, 20], sizes = [8, 4], strides = [1, 1]} : vector<8x96xf32> to vector<8x4xf32>
    %101 = vector.extract_strided_slice %3 {offsets = [0, 52], sizes = [8, 4], strides = [1, 1]} : vector<8x96xf32> to vector<8x4xf32>
    %102 = vector.extract_strided_slice %3 {offsets = [0, 84], sizes = [8, 4], strides = [1, 1]} : vector<8x96xf32> to vector<8x4xf32>
    %cst_41 = arith.constant dense<0.000000e+00> : vector<8x8xf32>
    %103 = tpu.matmul %100, %101, %cst_41 {dimension_numbers = #tpu.dot_dimension_numbers<[1], [1], [0], [0], [0, 0, 1, 0], [], []>} : vector<8x4xf32>, vector<8x4xf32>, vector<8x8xf32> -> vector<8x8xf32>
    %cst_42 = arith.constant dense<0xFF800000> : vector<8xf32>
    %104 = vector.multi_reduction <maximumf>, %103, %cst_42 [1] : vector<8x8xf32> to vector<8xf32>
    %105 = vector.shape_cast %104 : vector<8xf32> to vector<8x1xf32>
    %106 = vector.broadcast %105 : vector<8x1xf32> to vector<8x8xf32>
    %107 = arith.subf %103, %106 : vector<8x8xf32>
    %108 = math.exp %107 : vector<8x8xf32>
    %cst_43 = arith.constant dense<0.000000e+00> : vector<8xf32>
    %109 = vector.multi_reduction <add>, %108, %cst_43 [1] : vector<8x8xf32> to vector<8xf32>
    %110 = vector.shape_cast %109 : vector<8xf32> to vector<8x1xf32>
    %111 = tpu.reciprocal %110 {approx = true} : vector<8x1xf32> -> vector<8x1xf32>
    %112 = vector.broadcast %111 : vector<8x1xf32> to vector<8x8xf32>
    %113 = arith.mulf %108, %112 : vector<8x8xf32>
    %cst_44 = arith.constant dense<0.000000e+00> : vector<8x4xf32>
    %114 = tpu.matmul %113, %102, %cst_44 {dimension_numbers = #tpu.dot_dimension_numbers<[1], [0], [0], [1], [0, 0, 1, 1], [], []>} : vector<8x8xf32>, vector<8x4xf32>, vector<8x4xf32> -> vector<8x4xf32>
    %c5 = arith.constant 5 : index
    %c0_45 = arith.constant 0 : index
    %c0_46 = arith.constant 0 : index
    %115 = vector.load %arg3[%c5, %c0_45, %c0_46] : memref<8x4x32xf32, #tpu.memory_space<vmem>>, vector<1x4x32xf32>
    %116 = vector.shape_cast %115 : vector<1x4x32xf32> to vector<4x32xf32>
    %cst_47 = arith.constant dense<0.000000e+00> : vector<8x32xf32>
    %117 = tpu.matmul %114, %116, %cst_47 {dimension_numbers = #tpu.dot_dimension_numbers<[1], [0], [0], [1], [0, 0, 1, 1], [], []>} : vector<8x4xf32>, vector<4x32xf32>, vector<8x32xf32> -> vector<8x32xf32>
    %118 = arith.addf %99, %117 : vector<8x32xf32>
    %119 = vector.extract_strided_slice %3 {offsets = [0, 24], sizes = [8, 4], strides = [1, 1]} : vector<8x96xf32> to vector<8x4xf32>
    %120 = vector.extract_strided_slice %3 {offsets = [0, 56], sizes = [8, 4], strides = [1, 1]} : vector<8x96xf32> to vector<8x4xf32>
    %121 = vector.extract_strided_slice %3 {offsets = [0, 88], sizes = [8, 4], strides = [1, 1]} : vector<8x96xf32> to vector<8x4xf32>
    %cst_48 = arith.constant dense<0.000000e+00> : vector<8x8xf32>
    %122 = tpu.matmul %119, %120, %cst_48 {dimension_numbers = #tpu.dot_dimension_numbers<[1], [1], [0], [0], [0, 0, 1, 0], [], []>} : vector<8x4xf32>, vector<8x4xf32>, vector<8x8xf32> -> vector<8x8xf32>
    %cst_49 = arith.constant dense<0xFF800000> : vector<8xf32>
    %123 = vector.multi_reduction <maximumf>, %122, %cst_49 [1] : vector<8x8xf32> to vector<8xf32>
    %124 = vector.shape_cast %123 : vector<8xf32> to vector<8x1xf32>
    %125 = vector.broadcast %124 : vector<8x1xf32> to vector<8x8xf32>
    %126 = arith.subf %122, %125 : vector<8x8xf32>
    %127 = math.exp %126 : vector<8x8xf32>
    %cst_50 = arith.constant dense<0.000000e+00> : vector<8xf32>
    %128 = vector.multi_reduction <add>, %127, %cst_50 [1] : vector<8x8xf32> to vector<8xf32>
    %129 = vector.shape_cast %128 : vector<8xf32> to vector<8x1xf32>
    %130 = tpu.reciprocal %129 {approx = true} : vector<8x1xf32> -> vector<8x1xf32>
    %131 = vector.broadcast %130 : vector<8x1xf32> to vector<8x8xf32>
    %132 = arith.mulf %127, %131 : vector<8x8xf32>
    %cst_51 = arith.constant dense<0.000000e+00> : vector<8x4xf32>
    %133 = tpu.matmul %132, %121, %cst_51 {dimension_numbers = #tpu.dot_dimension_numbers<[1], [0], [0], [1], [0, 0, 1, 1], [], []>} : vector<8x8xf32>, vector<8x4xf32>, vector<8x4xf32> -> vector<8x4xf32>
    %c6 = arith.constant 6 : index
    %c0_52 = arith.constant 0 : index
    %c0_53 = arith.constant 0 : index
    %134 = vector.load %arg3[%c6, %c0_52, %c0_53] : memref<8x4x32xf32, #tpu.memory_space<vmem>>, vector<1x4x32xf32>
    %135 = vector.shape_cast %134 : vector<1x4x32xf32> to vector<4x32xf32>
    %cst_54 = arith.constant dense<0.000000e+00> : vector<8x32xf32>
    %136 = tpu.matmul %133, %135, %cst_54 {dimension_numbers = #tpu.dot_dimension_numbers<[1], [0], [0], [1], [0, 0, 1, 1], [], []>} : vector<8x4xf32>, vector<4x32xf32>, vector<8x32xf32> -> vector<8x32xf32>
    %137 = arith.addf %118, %136 : vector<8x32xf32>
    %138 = vector.extract_strided_slice %3 {offsets = [0, 28], sizes = [8, 4], strides = [1, 1]} : vector<8x96xf32> to vector<8x4xf32>
    %139 = vector.extract_strided_slice %3 {offsets = [0, 60], sizes = [8, 4], strides = [1, 1]} : vector<8x96xf32> to vector<8x4xf32>
    %140 = vector.extract_strided_slice %3 {offsets = [0, 92], sizes = [8, 4], strides = [1, 1]} : vector<8x96xf32> to vector<8x4xf32>
    %cst_55 = arith.constant dense<0.000000e+00> : vector<8x8xf32>
    %141 = tpu.matmul %138, %139, %cst_55 {dimension_numbers = #tpu.dot_dimension_numbers<[1], [1], [0], [0], [0, 0, 1, 0], [], []>} : vector<8x4xf32>, vector<8x4xf32>, vector<8x8xf32> -> vector<8x8xf32>
    %cst_56 = arith.constant dense<0xFF800000> : vector<8xf32>
    %142 = vector.multi_reduction <maximumf>, %141, %cst_56 [1] : vector<8x8xf32> to vector<8xf32>
    %143 = vector.shape_cast %142 : vector<8xf32> to vector<8x1xf32>
    %144 = vector.broadcast %143 : vector<8x1xf32> to vector<8x8xf32>
    %145 = arith.subf %141, %144 : vector<8x8xf32>
    %146 = math.exp %145 : vector<8x8xf32>
    %cst_57 = arith.constant dense<0.000000e+00> : vector<8xf32>
    %147 = vector.multi_reduction <add>, %146, %cst_57 [1] : vector<8x8xf32> to vector<8xf32>
    %148 = vector.shape_cast %147 : vector<8xf32> to vector<8x1xf32>
    %149 = tpu.reciprocal %148 {approx = true} : vector<8x1xf32> -> vector<8x1xf32>
    %150 = vector.broadcast %149 : vector<8x1xf32> to vector<8x8xf32>
    %151 = arith.mulf %146, %150 : vector<8x8xf32>
    %cst_58 = arith.constant dense<0.000000e+00> : vector<8x4xf32>
    %152 = tpu.matmul %151, %140, %cst_58 {dimension_numbers = #tpu.dot_dimension_numbers<[1], [0], [0], [1], [0, 0, 1, 1], [], []>} : vector<8x8xf32>, vector<8x4xf32>, vector<8x4xf32> -> vector<8x4xf32>
    %c7 = arith.constant 7 : index
    %c0_59 = arith.constant 0 : index
    %c0_60 = arith.constant 0 : index
    %153 = vector.load %arg3[%c7, %c0_59, %c0_60] : memref<8x4x32xf32, #tpu.memory_space<vmem>>, vector<1x4x32xf32>
    %154 = vector.shape_cast %153 : vector<1x4x32xf32> to vector<4x32xf32>
    %cst_61 = arith.constant dense<0.000000e+00> : vector<8x32xf32>
    %155 = tpu.matmul %152, %154, %cst_61 {dimension_numbers = #tpu.dot_dimension_numbers<[1], [0], [0], [1], [0, 0, 1, 1], [], []>} : vector<8x4xf32>, vector<4x32xf32>, vector<8x32xf32> -> vector<8x32xf32>
    %156 = arith.addf %137, %155 : vector<8x32xf32>
    %c0_62 = arith.constant 0 : index
    %c0_63 = arith.constant 0 : index
    %157 = vector.load %arg4[%c0_62, %c0_63] : memref<1x32xf32, #tpu.memory_space<vmem>>, vector<1x32xf32>
    %158 = vector.broadcast %157 : vector<1x32xf32> to vector<8x32xf32>
    %159 = arith.addf %156, %158 : vector<8x32xf32>
    %c0_64 = arith.constant 0 : index
    %c0_65 = arith.constant 0 : index
    %c0_66 = arith.constant 0 : index
    %160 = vector.load %arg5[%c0_64, %c0_65, %c0_66] : memref<1x8x32xf32, #tpu.memory_space<vmem>>, vector<1x8x32xf32>
    %161 = vector.shape_cast %160 : vector<1x8x32xf32> to vector<8x32xf32>
    %162 = vector.shape_cast %159 : vector<8x32xf32> to vector<1x8x32xf32>
    tpu.vector_store %arg5[%c0_64, %c0_65, %c0_66], %162 {strides = array<i32>} : memref<1x8x32xf32, #tpu.memory_space<vmem>>, vector<1x8x32xf32>,
    return
  }
  func.func @transform_0(%arg0: i32) -> (i32, i32, i32) {
    %c0_i32 = arith.constant 0 : i32
    %c0_i32_0 = arith.constant 0 : i32
    %c0_i32_1 = arith.constant 0 : i32
    return %arg0, %c0_i32, %c0_i32_0 : i32, i32, i32
  }
  func.func @transform_1(%arg0: i32) -> (i32, i32) {
    %c0_i32 = arith.constant 0 : i32
    %c0_i32_0 = arith.constant 0 : i32
    %c0_i32_1 = arith.constant 0 : i32
    return %c0_i32, %c0_i32_0 : i32, i32
  }
  func.func @transform_2(%arg0: i32) -> (i32, i32, i32) {
    %c0_i32 = arith.constant 0 : i32
    %c0_i32_0 = arith.constant 0 : i32
    %c0_i32_1 = arith.constant 0 : i32
    %c0_i32_2 = arith.constant 0 : i32
    return %c0_i32, %c0_i32_0, %c0_i32_1 : i32, i32, i32
  }
  func.func @transform_3(%arg0: i32) -> (i32, i32) {
    %c0_i32 = arith.constant 0 : i32
    %c0_i32_0 = arith.constant 0 : i32
    %c0_i32_1 = arith.constant 0 : i32
    return %c0_i32, %c0_i32_0 : i32, i32
  }
  func.func @transform_4(%arg0: i32) -> (i32, i32, i32) {
    %c0_i32 = arith.constant 0 : i32
    %c0_i32_0 = arith.constant 0 : i32
    %c0_i32_1 = arith.constant 0 : i32
    return %arg0, %c0_i32, %c0_i32_0 : i32, i32, i32
  }
}

module attributes {stable_mosaic.version = 11 : i64} {
  func.func @kernel(%arg0: i32, %arg1: memref<1x8x32xf32, #tpu.memory_space<vmem>>, %arg2: memref<32x96xf32, #tpu.memory_space<vmem>>, %arg3: memref<8x4x32xf32, #tpu.memory_space<vmem>>, %arg4: memref<1x32xf32, #tpu.memory_space<vmem>>, %arg5: memref<1x8x32xf32, #tpu.memory_space<vmem>>) attributes {dimension_semantics = [#tpu.dimension_semantics<parallel>], iteration_bounds = array<i64: 2>, scalar_prefetch = 0 : i64, scratch_operands = 0 : i64, tpu.core_type = #tpu.core_type<tc>, window_params = [{transform_indices = @transform_0, window_bounds = array<i64: 1, 8, 32>}, {pipeline_mode = #tpu.pipeline_mode<synchronous>, transform_indices = @transform_1, window_bounds = array<i64: 32, 96>}, {pipeline_mode = #tpu.pipeline_mode<synchronous>, transform_indices = @transform_2, window_bounds = array<i64: 8, 4, 32>}, {pipeline_mode = #tpu.pipeline_mode<synchronous>, transform_indices = @transform_3, window_bounds = array<i64: 1, 32>}, {transform_indices = @transform_4, window_bounds = array<i64: 1, 8, 32>}]} {
    %c0 = arith.constant 0 : index
    %c0_0 = arith.constant 0 : index
    %c0_1 = arith.constant 0 : index
    %0 = vector.load %arg1[%c0, %c0_0, %c0_1] : memref<1x8x32xf32, #tpu.memory_space<vmem>>, vector<1x8x32xf32>
    %1 = vector.shape_cast %0 : vector<1x8x32xf32> to vector<8x32xf32>
    %c0_2 = arith.constant 0 : index
    %c0_3 = arith.constant 0 : index
    %2 = vector.load %arg2[%c0_2, %c0_3] : memref<32x96xf32, #tpu.memory_space<vmem>>, vector<32x96xf32>
    %cst = arith.constant dense<0.000000e+00> : vector<8x96xf32>
    %3 = tpu.matmul %1, %2, %cst {dimension_numbers = #tpu.dot_dimension_numbers<[1], [0], [0], [1], [0, 0, 1, 1], [], []>} : vector<8x32xf32>, vector<32x96xf32>, vector<8x96xf32> -> vector<8x96xf32>
    %cst_4 = arith.constant 0.000000e+00 : f32
    %4 = vector.broadcast %cst_4 : f32 to vector<8x32xf32>
    %5 = vector.extract_strided_slice %3 {offsets = [0, 0], sizes = [8, 4], strides = [1, 1]} : vector<8x96xf32> to vector<8x4xf32>
    %6 = vector.extract_strided_slice %3 {offsets = [0, 32], sizes = [8, 4], strides = [1, 1]} : vector<8x96xf32> to vector<8x4xf32>
    %7 = vector.extract_strided_slice %3 {offsets = [0, 64], sizes = [8, 4], strides = [1, 1]} : vector<8x96xf32> to vector<8x4xf32>
    %cst_5 = arith.constant dense<0.000000e+00> : vector<8x8xf32>
    %8 = tpu.matmul %5, %6, %cst_5 {dimension_numbers = #tpu.dot_dimension_numbers<[1], [1], [0], [0], [0, 0, 1, 0], [], []>} : vector<8x4xf32>, vector<8x4xf32>, vector<8x8xf32> -> vector<8x8xf32>
    %cst_6 = arith.constant dense<0xFF800000> : vector<8xf32>
    %9 = vector.multi_reduction <maximumf>, %8, %cst_6 [1] : vector<8x8xf32> to vector<8xf32>
    %10 = vector.shape_cast %9 : vector<8xf32> to vector<8x1xf32>
    %11 = vector.broadcast %10 : vector<8x1xf32> to vector<8x8xf32>
    %12 = arith.subf %8, %11 : vector<8x8xf32>
    %13 = math.exp %12 : vector<8x8xf32>
    %cst_7 = arith.constant dense<0.000000e+00> : vector<8xf32>
    %14 = vector.multi_reduction <add>, %13, %cst_7 [1] : vector<8x8xf32> to vector<8xf32>
    %15 = vector.shape_cast %14 : vector<8xf32> to vector<8x1xf32>
    %16 = tpu.reciprocal %15 {approx = true} : vector<8x1xf32> -> vector<8x1xf32>
    %17 = vector.broadcast %16 : vector<8x1xf32> to vector<8x8xf32>
    %18 = arith.mulf %13, %17 : vector<8x8xf32>
    %cst_8 = arith.constant dense<0.000000e+00> : vector<8x4xf32>
    %19 = tpu.matmul %18, %7, %cst_8 {dimension_numbers = #tpu.dot_dimension_numbers<[1], [0], [0], [1], [0, 0, 1, 1], [], []>} : vector<8x8xf32>, vector<8x4xf32>, vector<8x4xf32> -> vector<8x4xf32>
    %c0_9 = arith.constant 0 : index
    %c0_10 = arith.constant 0 : index
    %c0_11 = arith.constant 0 : index
    %20 = vector.load %arg3[%c0_9, %c0_10, %c0_11] : memref<8x4x32xf32, #tpu.memory_space<vmem>>, vector<1x4x32xf32>
    %21 = vector.shape_cast %20 : vector<1x4x32xf32> to vector<4x32xf32>
    %cst_12 = arith.constant dense<0.000000e+00> : vector<8x32xf32>
    %22 = tpu.matmul %19, %21, %cst_12 {dimension_numbers = #tpu.dot_dimension_numbers<[1], [0], [0], [1], [0, 0, 1, 1], [], []>} : vector<8x4xf32>, vector<4x32xf32>, vector<8x32xf32> -> vector<8x32xf32>
    %23 = arith.addf %4, %22 : vector<8x32xf32>
    %24 = vector.extract_strided_slice %3 {offsets = [0, 4], sizes = [8, 4], strides = [1, 1]} : vector<8x96xf32> to vector<8x4xf32>
    %25 = vector.extract_strided_slice %3 {offsets = [0, 36], sizes = [8, 4], strides = [1, 1]} : vector<8x96xf32> to vector<8x4xf32>
    %26 = vector.extract_strided_slice %3 {offsets = [0, 68], sizes = [8, 4], strides = [1, 1]} : vector<8x96xf32> to vector<8x4xf32>
    %cst_13 = arith.constant dense<0.000000e+00> : vector<8x8xf32>
    %27 = tpu.matmul %24, %25, %cst_13 {dimension_numbers = #tpu.dot_dimension_numbers<[1], [1], [0], [0], [0, 0, 1, 0], [], []>} : vector<8x4xf32>, vector<8x4xf32>, vector<8x8xf32> -> vector<8x8xf32>
    %cst_14 = arith.constant dense<0xFF800000> : vector<8xf32>
    %28 = vector.multi_reduction <maximumf>, %27, %cst_14 [1] : vector<8x8xf32> to vector<8xf32>
    %29 = vector.shape_cast %28 : vector<8xf32> to vector<8x1xf32>
    %30 = vector.broadcast %29 : vector<8x1xf32> to vector<8x8xf32>
    %31 = arith.subf %27, %30 : vector<8x8xf32>
    %32 = math.exp %31 : vector<8x8xf32>
    %cst_15 = arith.constant dense<0.000000e+00> : vector<8xf32>
    %33 = vector.multi_reduction <add>, %32, %cst_15 [1] : vector<8x8xf32> to vector<8xf32>
    %34 = vector.shape_cast %33 : vector<8xf32> to vector<8x1xf32>
    %35 = tpu.reciprocal %34 {approx = true} : vector<8x1xf32> -> vector<8x1xf32>
    %36 = vector.broadcast %35 : vector<8x1xf32> to vector<8x8xf32>
    %37 = arith.mulf %32, %36 : vector<8x8xf32>
    %cst_16 = arith.constant dense<0.000000e+00> : vector<8x4xf32>
    %38 = tpu.matmul %37, %26, %cst_16 {dimension_numbers = #tpu.dot_dimension_numbers<[1], [0], [0], [1], [0, 0, 1, 1], [], []>} : vector<8x8xf32>, vector<8x4xf32>, vector<8x4xf32> -> vector<8x4xf32>
    %c1 = arith.constant 1 : index
    %c0_17 = arith.constant 0 : index
    %c0_18 = arith.constant 0 : index
    %39 = vector.load %arg3[%c1, %c0_17, %c0_18] : memref<8x4x32xf32, #tpu.memory_space<vmem>>, vector<1x4x32xf32>
    %40 = vector.shape_cast %39 : vector<1x4x32xf32> to vector<4x32xf32>
    %cst_19 = arith.constant dense<0.000000e+00> : vector<8x32xf32>
    %41 = tpu.matmul %38, %40, %cst_19 {dimension_numbers = #tpu.dot_dimension_numbers<[1], [0], [0], [1], [0, 0, 1, 1], [], []>} : vector<8x4xf32>, vector<4x32xf32>, vector<8x32xf32> -> vector<8x32xf32>
    %42 = arith.addf %23, %41 : vector<8x32xf32>
    %43 = vector.extract_strided_slice %3 {offsets = [0, 8], sizes = [8, 4], strides = [1, 1]} : vector<8x96xf32> to vector<8x4xf32>
    %44 = vector.extract_strided_slice %3 {offsets = [0, 40], sizes = [8, 4], strides = [1, 1]} : vector<8x96xf32> to vector<8x4xf32>
    %45 = vector.extract_strided_slice %3 {offsets = [0, 72], sizes = [8, 4], strides = [1, 1]} : vector<8x96xf32> to vector<8x4xf32>
    %cst_20 = arith.constant dense<0.000000e+00> : vector<8x8xf32>
    %46 = tpu.matmul %43, %44, %cst_20 {dimension_numbers = #tpu.dot_dimension_numbers<[1], [1], [0], [0], [0, 0, 1, 0], [], []>} : vector<8x4xf32>, vector<8x4xf32>, vector<8x8xf32> -> vector<8x8xf32>
    %cst_21 = arith.constant dense<0xFF800000> : vector<8xf32>
    %47 = vector.multi_reduction <maximumf>, %46, %cst_21 [1] : vector<8x8xf32> to vector<8xf32>
    %48 = vector.shape_cast %47 : vector<8xf32> to vector<8x1xf32>
    %49 = vector.broadcast %48 : vector<8x1xf32> to vector<8x8xf32>
    %50 = arith.subf %46, %49 : vector<8x8xf32>
    %51 = math.exp %50 : vector<8x8xf32>
    %cst_22 = arith.constant dense<0.000000e+00> : vector<8xf32>
    %52 = vector.multi_reduction <add>, %51, %cst_22 [1] : vector<8x8xf32> to vector<8xf32>
    %53 = vector.shape_cast %52 : vector<8xf32> to vector<8x1xf32>
    %54 = tpu.reciprocal %53 {approx = true} : vector<8x1xf32> -> vector<8x1xf32>
    %55 = vector.broadcast %54 : vector<8x1xf32> to vector<8x8xf32>
    %56 = arith.mulf %51, %55 : vector<8x8xf32>
    %cst_23 = arith.constant dense<0.000000e+00> : vector<8x4xf32>
    %57 = tpu.matmul %56, %45, %cst_23 {dimension_numbers = #tpu.dot_dimension_numbers<[1], [0], [0], [1], [0, 0, 1, 1], [], []>} : vector<8x8xf32>, vector<8x4xf32>, vector<8x4xf32> -> vector<8x4xf32>
    %c2 = arith.constant 2 : index
    %c0_24 = arith.constant 0 : index
    %c0_25 = arith.constant 0 : index
    %58 = vector.load %arg3[%c2, %c0_24, %c0_25] : memref<8x4x32xf32, #tpu.memory_space<vmem>>, vector<1x4x32xf32>
    %59 = vector.shape_cast %58 : vector<1x4x32xf32> to vector<4x32xf32>
    %cst_26 = arith.constant dense<0.000000e+00> : vector<8x32xf32>
    %60 = tpu.matmul %57, %59, %cst_26 {dimension_numbers = #tpu.dot_dimension_numbers<[1], [0], [0], [1], [0, 0, 1, 1], [], []>} : vector<8x4xf32>, vector<4x32xf32>, vector<8x32xf32> -> vector<8x32xf32>
    %61 = arith.addf %42, %60 : vector<8x32xf32>
    %62 = vector.extract_strided_slice %3 {offsets = [0, 12], sizes = [8, 4], strides = [1, 1]} : vector<8x96xf32> to vector<8x4xf32>
    %63 = vector.extract_strided_slice %3 {offsets = [0, 44], sizes = [8, 4], strides = [1, 1]} : vector<8x96xf32> to vector<8x4xf32>
    %64 = vector.extract_strided_slice %3 {offsets = [0, 76], sizes = [8, 4], strides = [1, 1]} : vector<8x96xf32> to vector<8x4xf32>
    %cst_27 = arith.constant dense<0.000000e+00> : vector<8x8xf32>
    %65 = tpu.matmul %62, %63, %cst_27 {dimension_numbers = #tpu.dot_dimension_numbers<[1], [1], [0], [0], [0, 0, 1, 0], [], []>} : vector<8x4xf32>, vector<8x4xf32>, vector<8x8xf32> -> vector<8x8xf32>
    %cst_28 = arith.constant dense<0xFF800000> : vector<8xf32>
    %66 = vector.multi_reduction <maximumf>, %65, %cst_28 [1] : vector<8x8xf32> to vector<8xf32>
    %67 = vector.shape_cast %66 : vector<8xf32> to vector<8x1xf32>
    %68 = vector.broadcast %67 : vector<8x1xf32> to vector<8x8xf32>
    %69 = arith.subf %65, %68 : vector<8x8xf32>
    %70 = math.exp %69 : vector<8x8xf32>
    %cst_29 = arith.constant dense<0.000000e+00> : vector<8xf32>
    %71 = vector.multi_reduction <add>, %70, %cst_29 [1] : vector<8x8xf32> to vector<8xf32>
    %72 = vector.shape_cast %71 : vector<8xf32> to vector<8x1xf32>
    %73 = tpu.reciprocal %72 {approx = true} : vector<8x1xf32> -> vector<8x1xf32>
    %74 = vector.broadcast %73 : vector<8x1xf32> to vector<8x8xf32>
    %75 = arith.mulf %70, %74 : vector<8x8xf32>
    %cst_30 = arith.constant dense<0.000000e+00> : vector<8x4xf32>
    %76 = tpu.matmul %75, %64, %cst_30 {dimension_numbers = #tpu.dot_dimension_numbers<[1], [0], [0], [1], [0, 0, 1, 1], [], []>} : vector<8x8xf32>, vector<8x4xf32>, vector<8x4xf32> -> vector<8x4xf32>
    %c3 = arith.constant 3 : index
    %c0_31 = arith.constant 0 : index
    %c0_32 = arith.constant 0 : index
    %77 = vector.load %arg3[%c3, %c0_31, %c0_32] : memref<8x4x32xf32, #tpu.memory_space<vmem>>, vector<1x4x32xf32>
    %78 = vector.shape_cast %77 : vector<1x4x32xf32> to vector<4x32xf32>
    %cst_33 = arith.constant dense<0.000000e+00> : vector<8x32xf32>
    %79 = tpu.matmul %76, %78, %cst_33 {dimension_numbers = #tpu.dot_dimension_numbers<[1], [0], [0], [1], [0, 0, 1, 1], [], []>} : vector<8x4xf32>, vector<4x32xf32>, vector<8x32xf32> -> vector<8x32xf32>
    %80 = arith.addf %61, %79 : vector<8x32xf32>
    %81 = vector.extract_strided_slice %3 {offsets = [0, 16], sizes = [8, 4], strides = [1, 1]} : vector<8x96xf32> to vector<8x4xf32>
    %82 = vector.extract_strided_slice %3 {offsets = [0, 48], sizes = [8, 4], strides = [1, 1]} : vector<8x96xf32> to vector<8x4xf32>
    %83 = vector.extract_strided_slice %3 {offsets = [0, 80], sizes = [8, 4], strides = [1, 1]} : vector<8x96xf32> to vector<8x4xf32>
    %cst_34 = arith.constant dense<0.000000e+00> : vector<8x8xf32>
    %84 = tpu.matmul %81, %82, %cst_34 {dimension_numbers = #tpu.dot_dimension_numbers<[1], [1], [0], [0], [0, 0, 1, 0], [], []>} : vector<8x4xf32>, vector<8x4xf32>, vector<8x8xf32> -> vector<8x8xf32>
    %cst_35 = arith.constant dense<0xFF800000> : vector<8xf32>
    %85 = vector.multi_reduction <maximumf>, %84, %cst_35 [1] : vector<8x8xf32> to vector<8xf32>
    %86 = vector.shape_cast %85 : vector<8xf32> to vector<8x1xf32>
    %87 = vector.broadcast %86 : vector<8x1xf32> to vector<8x8xf32>
    %88 = arith.subf %84, %87 : vector<8x8xf32>
    %89 = math.exp %88 : vector<8x8xf32>
    %cst_36 = arith.constant dense<0.000000e+00> : vector<8xf32>
    %90 = vector.multi_reduction <add>, %89, %cst_36 [1] : vector<8x8xf32> to vector<8xf32>
    %91 = vector.shape_cast %90 : vector<8xf32> to vector<8x1xf32>
    %92 = tpu.reciprocal %91 {approx = true} : vector<8x1xf32> -> vector<8x1xf32>
    %93 = vector.broadcast %92 : vector<8x1xf32> to vector<8x8xf32>
    %94 = arith.mulf %89, %93 : vector<8x8xf32>
    %cst_37 = arith.constant dense<0.000000e+00> : vector<8x4xf32>
    %95 = tpu.matmul %94, %83, %cst_37 {dimension_numbers = #tpu.dot_dimension_numbers<[1], [0], [0], [1], [0, 0, 1, 1], [], []>} : vector<8x8xf32>, vector<8x4xf32>, vector<8x4xf32> -> vector<8x4xf32>
    %c4 = arith.constant 4 : index
    %c0_38 = arith.constant 0 : index
    %c0_39 = arith.constant 0 : index
    %96 = vector.load %arg3[%c4, %c0_38, %c0_39] : memref<8x4x32xf32, #tpu.memory_space<vmem>>, vector<1x4x32xf32>
    %97 = vector.shape_cast %96 : vector<1x4x32xf32> to vector<4x32xf32>
    %cst_40 = arith.constant dense<0.000000e+00> : vector<8x32xf32>
    %98 = tpu.matmul %95, %97, %cst_40 {dimension_numbers = #tpu.dot_dimension_numbers<[1], [0], [0], [1], [0, 0, 1, 1], [], []>} : vector<8x4xf32>, vector<4x32xf32>, vector<8x32xf32> -> vector<8x32xf32>
    %99 = arith.addf %80, %98 : vector<8x32xf32>
    %100 = vector.extract_strided_slice %3 {offsets = [0, 20], sizes = [8, 4], strides = [1, 1]} : vector<8x96xf32> to vector<8x4xf32>
    %101 = vector.extract_strided_slice %3 {offsets = [0, 52], sizes = [8, 4], strides = [1, 1]} : vector<8x96xf32> to vector<8x4xf32>
    %102 = vector.extract_strided_slice %3 {offsets = [0, 84], sizes = [8, 4], strides = [1, 1]} : vector<8x96xf32> to vector<8x4xf32>
    %cst_41 = arith.constant dense<0.000000e+00> : vector<8x8xf32>
    %103 = tpu.matmul %100, %101, %cst_41 {dimension_numbers = #tpu.dot_dimension_numbers<[1], [1], [0], [0], [0, 0, 1, 0], [], []>} : vector<8x4xf32>, vector<8x4xf32>, vector<8x8xf32> -> vector<8x8xf32>
    %cst_42 = arith.constant dense<0xFF800000> : vector<8xf32>
    %104 = vector.multi_reduction <maximumf>, %103, %cst_42 [1] : vector<8x8xf32> to vector<8xf32>
    %105 = vector.shape_cast %104 : vector<8xf32> to vector<8x1xf32>
    %106 = vector.broadcast %105 : vector<8x1xf32> to vector<8x8xf32>
    %107 = arith.subf %103, %106 : vector<8x8xf32>
    %108 = math.exp %107 : vector<8x8xf32>
    %cst_43 = arith.constant dense<0.000000e+00> : vector<8xf32>
    %109 = vector.multi_reduction <add>, %108, %cst_43 [1] : vector<8x8xf32> to vector<8xf32>
    %110 = vector.shape_cast %109 : vector<8xf32> to vector<8x1xf32>
    %111 = tpu.reciprocal %110 {approx = true} : vector<8x1xf32> -> vector<8x1xf32>
    %112 = vector.broadcast %111 : vector<8x1xf32> to vector<8x8xf32>
    %113 = arith.mulf %108, %112 : vector<8x8xf32>
    %cst_44 = arith.constant dense<0.000000e+00> : vector<8x4xf32>
    %114 = tpu.matmul %113, %102, %cst_44 {dimension_numbers = #tpu.dot_dimension_numbers<[1], [0], [0], [1], [0, 0, 1, 1], [], []>} : vector<8x8xf32>, vector<8x4xf32>, vector<8x4xf32> -> vector<8x4xf32>
    %c5 = arith.constant 5 : index
    %c0_45 = arith.constant 0 : index
    %c0_46 = arith.constant 0 : index
    %115 = vector.load %arg3[%c5, %c0_45, %c0_46] : memref<8x4x32xf32, #tpu.memory_space<vmem>>, vector<1x4x32xf32>
    %116 = vector.shape_cast %115 : vector<1x4x32xf32> to vector<4x32xf32>
    %cst_47 = arith.constant dense<0.000000e+00> : vector<8x32xf32>
    %117 = tpu.matmul %114, %116, %cst_47 {dimension_numbers = #tpu.dot_dimension_numbers<[1], [0], [0], [1], [0, 0, 1, 1], [], []>} : vector<8x4xf32>, vector<4x32xf32>, vector<8x32xf32> -> vector<8x32xf32>
    %118 = arith.addf %99, %117 : vector<8x32xf32>
    %119 = vector.extract_strided_slice %3 {offsets = [0, 24], sizes = [8, 4], strides = [1, 1]} : vector<8x96xf32> to vector<8x4xf32>
    %120 = vector.extract_strided_slice %3 {offsets = [0, 56], sizes = [8, 4], strides = [1, 1]} : vector<8x96xf32> to vector<8x4xf32>
    %121 = vector.extract_strided_slice %3 {offsets = [0, 88], sizes = [8, 4], strides = [1, 1]} : vector<8x96xf32> to vector<8x4xf32>
    %cst_48 = arith.constant dense<0.000000e+00> : vector<8x8xf32>
    %122 = tpu.matmul %119, %120, %cst_48 {dimension_numbers = #tpu.dot_dimension_numbers<[1], [1], [0], [0], [0, 0, 1, 0], [], []>} : vector<8x4xf32>, vector<8x4xf32>, vector<8x8xf32> -> vector<8x8xf32>
    %cst_49 = arith.constant dense<0xFF800000> : vector<8xf32>
    %123 = vector.multi_reduction <maximumf>, %122, %cst_49 [1] : vector<8x8xf32> to vector<8xf32>
    %124 = vector.shape_cast %123 : vector<8xf32> to vector<8x1xf32>
    %125 = vector.broadcast %124 : vector<8x1xf32> to vector<8x8xf32>
    %126 = arith.subf %122, %125 : vector<8x8xf32>
    %127 = math.exp %126 : vector<8x8xf32>
    %cst_50 = arith.constant dense<0.000000e+00> : vector<8xf32>
    %128 = vector.multi_reduction <add>, %127, %cst_50 [1] : vector<8x8xf32> to vector<8xf32>
    %129 = vector.shape_cast %128 : vector<8xf32> to vector<8x1xf32>
    %130 = tpu.reciprocal %129 {approx = true} : vector<8x1xf32> -> vector<8x1xf32>
    %131 = vector.broadcast %130 : vector<8x1xf32> to vector<8x8xf32>
    %132 = arith.mulf %127, %131 : vector<8x8xf32>
    %cst_51 = arith.constant dense<0.000000e+00> : vector<8x4xf32>
    %133 = tpu.matmul %132, %121, %cst_51 {dimension_numbers = #tpu.dot_dimension_numbers<[1], [0], [0], [1], [0, 0, 1, 1], [], []>} : vector<8x8xf32>, vector<8x4xf32>, vector<8x4xf32> -> vector<8x4xf32>
    %c6 = arith.constant 6 : index
    %c0_52 = arith.constant 0 : index
    %c0_53 = arith.constant 0 : index
    %134 = vector.load %arg3[%c6, %c0_52, %c0_53] : memref<8x4x32xf32, #tpu.memory_space<vmem>>, vector<1x4x32xf32>
    %135 = vector.shape_cast %134 : vector<1x4x32xf32> to vector<4x32xf32>
    %cst_54 = arith.constant dense<0.000000e+00> : vector<8x32xf32>
    %136 = tpu.matmul %133, %135, %cst_54 {dimension_numbers = #tpu.dot_dimension_numbers<[1], [0], [0], [1], [0, 0, 1, 1], [], []>} : vector<8x4xf32>, vector<4x32xf32>, vector<8x32xf32> -> vector<8x32xf32>
    %137 = arith.addf %118, %136 : vector<8x32xf32>
    %138 = vector.extract_strided_slice %3 {offsets = [0, 28], sizes = [8, 4], strides = [1, 1]} : vector<8x96xf32> to vector<8x4xf32>
    %139 = vector.extract_strided_slice %3 {offsets = [0, 60], sizes = [8, 4], strides = [1, 1]} : vector<8x96xf32> to vector<8x4xf32>
    %140 = vector.extract_strided_slice %3 {offsets = [0, 92], sizes = [8, 4], strides = [1, 1]} : vector<8x96xf32> to vector<8x4xf32>
    %cst_55 = arith.constant dense<0.000000e+00> : vector<8x8xf32>
    %141 = tpu.matmul %138, %139, %cst_55 {dimension_numbers = #tpu.dot_dimension_numbers<[1], [1], [0], [0], [0, 0, 1, 0], [], []>} : vector<8x4xf32>, vector<8x4xf32>, vector<8x8xf32> -> vector<8x8xf32>
    %cst_56 = arith.constant dense<0xFF800000> : vector<8xf32>
    %142 = vector.multi_reduction <maximumf>, %141, %cst_56 [1] : vector<8x8xf32> to vector<8xf32>
    %143 = vector.shape_cast %142 : vector<8xf32> to vector<8x1xf32>
    %144 = vector.broadcast %143 : vector<8x1xf32> to vector<8x8xf32>
    %145 = arith.subf %141, %144 : vector<8x8xf32>
    %146 = math.exp %145 : vector<8x8xf32>
    %cst_57 = arith.constant dense<0.000000e+00> : vector<8xf32>
    %147 = vector.multi_reduction <add>, %146, %cst_57 [1] : vector<8x8xf32> to vector<8xf32>
    %148 = vector.shape_cast %147 : vector<8xf32> to vector<8x1xf32>
    %149 = tpu.reciprocal %148 {approx = true} : vector<8x1xf32> -> vector<8x1xf32>
    %150 = vector.broadcast %149 : vector<8x1xf32> to vector<8x8xf32>
    %151 = arith.mulf %146, %150 : vector<8x8xf32>
    %cst_58 = arith.constant dense<0.000000e+00> : vector<8x4xf32>
    %152 = tpu.matmul %151, %140, %cst_58 {dimension_numbers = #tpu.dot_dimension_numbers<[1], [0], [0], [1], [0, 0, 1, 1], [], []>} : vector<8x8xf32>, vector<8x4xf32>, vector<8x4xf32> -> vector<8x4xf32>
    %c7 = arith.constant 7 : index
    %c0_59 = arith.constant 0 : index
    %c0_60 = arith.constant 0 : index
    %153 = vector.load %arg3[%c7, %c0_59, %c0_60] : memref<8x4x32xf32, #tpu.memory_space<vmem>>, vector<1x4x32xf32>
    %154 = vector.shape_cast %153 : vector<1x4x32xf32> to vector<4x32xf32>
    %cst_61 = arith.constant dense<0.000000e+00> : vector<8x32xf32>
    %155 = tpu.matmul %152, %154, %cst_61 {dimension_numbers = #tpu.dot_dimension_numbers<[1], [0], [0], [1], [0, 0, 1, 1], [], []>} : vector<8x4xf32>, vector<4x32xf32>, vector<8x32xf32> -> vector<8x32xf32>
    %156 = arith.addf %137, %155 : vector<8x32xf32>
    %c0_62 = arith.constant 0 : index
    %c0_63 = arith.constant 0 : index
    %157 = vector.load %arg4[%c0_62, %c0_63] : memref<1x32xf32, #tpu.memory_space<vmem>>, vector<1x32xf32>
    %158 = vector.broadcast %157 : vector<1x32xf32> to vector<8x32xf32>
    %159 = arith.addf %156, %158 : vector<8x32xf32>
    %c0_64 = arith.constant 0 : index
    %c0_65 = arith.constant 0 : index
    %c0_66 = arith.constant 0 : index
    %160 = vector.load %arg5[%c0_64, %c0_65, %c0_66] : memref<1x8x32xf32, #tpu.memory_space<vmem>>, vector<1x8x32xf32>
    %161 = vector.shape_cast %160 : vector<1x8x32xf32> to vector<8x32xf32>
    %162 = vector.shape_cast %159 : vector<8x32xf32> to vector<1x8x32xf32>
    tpu.vector_store %arg5[%c0_64, %c0_65, %c0_66], %162 {strides = array<i32>} : memref<1x8x32xf32, #tpu.memory_space<vmem>>, vector<1x8x32xf32>,
    return
  }
  func.func @transform_0(%arg0: i32) -> (i32, i32, i32) {
    %c0_i32 = arith.constant 0 : i32
    %c0_i32_0 = arith.constant 0 : i32
    %c0_i32_1 = arith.constant 0 : i32
    return %arg0, %c0_i32, %c0_i32_0 : i32, i32, i32
  }
  func.func @transform_1(%arg0: i32) -> (i32, i32) {
    %c0_i32 = arith.constant 0 : i32
    %c0_i32_0 = arith.constant 0 : i32
    %c0_i32_1 = arith.constant 0 : i32
    return %c0_i32, %c0_i32_0 : i32, i32
  }
  func.func @transform_2(%arg0: i32) -> (i32, i32, i32) {
    %c0_i32 = arith.constant 0 : i32
    %c0_i32_0 = arith.constant 0 : i32
    %c0_i32_1 = arith.constant 0 : i32
    %c0_i32_2 = arith.constant 0 : i32
    return %c0_i32, %c0_i32_0, %c0_i32_1 : i32, i32, i32
  }
  func.func @transform_3(%arg0: i32) -> (i32, i32) {
    %c0_i32 = arith.constant 0 : i32
    %c0_i32_0 = arith.constant 0 : i32
    %c0_i32_1 = arith.constant 0 : i32
    return %c0_i32, %c0_i32_0 : i32, i32
  }
  func.func @transform_4(%arg0: i32) -> (i32, i32, i32) {
    %c0_i32 = arith.constant 0 : i32
    %c0_i32_0 = arith.constant 0 : i32
    %c0_i32_1 = arith.constant 0 : i32
    return %arg0, %c0_i32, %c0_i32_0 : i32, i32, i32
  }
}

</mosaic_0001>

<bundles_post_ra>
// kernel: tpu_custom_call.1
= control target key start
LH: loop header
LB: loop body
LE: loop exit
PB: predicated region body
PF: predicated region fallthrough
CT: control target
= control target key end

     0   :  { %9 = vsyncpa [#allocation3], 0  ;;  %s3372_s0 = inlined_call_operand.hbm [shape: f32[2,8,32], index: 0, kind: input, shape index: {}]   ;;  %s3373_s1 = inlined_call_operand.hbm [shape: f32[32,96], index: 1, kind: input, shape index: {}]   ;;  %s3374_s2 = inlined_call_operand.hbm [shape: f32[8,4,32], index: 2, kind: input, shape index: {}]   ;;  %s3375_s3 = inlined_call_operand.vmem [shape: f32[1,32], index: 3, kind: input, shape index: {}]   ;;  %s3376_s4 = inlined_call_operand.hbm [shape: f32[2,8,32], index: 4, kind: output, shape index: {}]  }
   0x1   :  { %11 = vsyncpa [#allocation3 + $0x1], 0 }
   0x2   :  { %12 = vsyncpa [#allocation6], 0 }
   0x3   :  { %13 = vsyncpa [#allocation4], 0 }
   0x4   :  { %15 = vsyncpa [#allocation4 + $0x1], 0  ;;  %s2978_s15 = smov 0   ;;  %s2980_s16 = smov 0  }
   0x5   :  { %s2982_s17 = smov 0   ;;  %s2984_s18 = smov 0  }
   0x6 LB: > { %s2999_s19 = sadd.s32 4294967295, %s2917_s18   ;;  %s2384_s20 = sadd.s32 4294967294, %s2917_s18   ;;  %s2917_s18 = sphi %s2984_s18, %s3396_s18   ;;  %s2913_s17 = sphi %s2982_s17, %s3395_s17   ;;  %s2909_s16 = sphi %s2980_s16, %s3394_s16   ;;  %s2905_s15 = sphi %s2978_s15, %s3393_s15  }
   0x7   : > { %p41_p0 = scmp.ne.s32.totalorder %s2909_s16, %s2905_s15  ;;  %p3377_p1 = scmp.eq.s32.totalorder %s2999_s19, 0 }
   0x8   : > { %p134_p3 = scmp.eq.s32.totalorder %s2384_s20, 1  ;;  %p2385_p5 = scmp.ge.s32.totalorder %s2917_s18, 1 }
   0x9   : > { %p3008_p4 = por %p3377_p1, %p41_p0  ;;  %p141_p7 = scmp.lt.s32.totalorder %s2917_s18, 3 }
   0xa   : > { %p3013_p6 = por %p134_p3, %p41_p0  ;;  %s2919_s24 = smov [#allocation5]  }
   0xb   : > { %s3380_s21 = scalar_select %p3008_p4, 1, 0 }
   0xc   : > { %s3381_s22 = scalar_select %p3013_p6, 1, 0 }
   0xd   : > { %p3018_p8 = pnand %p2385_p5, %p141_p7  ;;  %s153_s25 = sshll.u32 %s2919_s24, 4  ;;  %s3022_s25 = int_to_ptr.vmem [resolvable:$true] %s153_s25 }
   0xe   : > { %s2920_s27 = smov [#allocation7]   ;;  %s2761_s5 = scalar_lea.hbm %s3373_s1, 512 }
   0xf   : > { %p2644_p9 = pneg %p3018_p8  ;;  %s166_s28 = sshll.u32 %s2920_s27, 4  ;;  %s3033_s28 = int_to_ptr.vmem [resolvable:$true] %s166_s28 }
  0x10   : > { %p2762_p12 = scmp.ne.s32.totalorder %s3373_s1, %s2761_s5  ;;  %p2768_p5 = scmp.lt.u32.totalorder %s2761_s5, %s3373_s1 }
  0x11   : > { %p3029_p11 = pnand %p2644_p9, %p3377_p1 }
  0x13   : > { %p2763_p13 = pneg %p3029_p11 }
  0x15   : > { %p2764_p0 = pnand %p2763_p13, %p2762_p12 }
  0x17   : > { %p2765_p3 = pneg %p2764_p0 }
  0x19   : > { %p2770_p7 = pnand %p2768_p5, %p2765_p3 }
  0x1b   : > { %2773 = shalt.err (!%p2770_p7)
}
  0x1c   : > { %s2774_s10 = scalar_lea.vmem %s3022_s25, 512  ;;  %p2782_p2 = scmp.lt.s32.totalorder %s3022_s25, %s3022_s25 }
  0x1d   : > { %p2775_p9 = scmp.ne.s32.totalorder %s3022_s25, %s2774_s10  ;;  %p2783_p12 = scmp.lt.s32.totalorder %s2774_s10, %s2774_s10 }
  0x1f   : > { %p2777_p10 = pnand %p2775_p9, %p2763_p13  ;;  %p2784_p0 = por %p2783_p12, %p2782_p2 }
  0x21   : > { %p2778_p1 = pneg %p2777_p10 }
  0x23   : > { %p2785_p6 = pnand %p2784_p0, %p2778_p1 }
  0x25   : > { %2788 = shalt.err (!%p2785_p6)
}
  0x26   : > { %s2921_s11 = smov 128   ;;  %s2922_s12 = smov 8  }
  0x27   : > { %2647 = dma.hbm_to_vmem [thread:$0]  (!%p3029_p11), %s3373_s1, 512, %s3022_s25, [#allocation6], %s2921_s11, %s2921_s11, %s2922_s12  }
  0x28   : > { %s2789_s27 = scalar_lea.hbm %s3374_s2, 512 }
  0x29   : > { %p2790_p2 = scmp.ne.s32.totalorder %s3374_s2, %s2789_s27  ;;  %p2796_p10 = scmp.lt.u32.totalorder %s2789_s27, %s3374_s2 }
  0x2b   : > { %p2792_p1 = pnand %p2790_p2, %p2763_p13 }
  0x2d   : > { %p2793_p6 = pneg %p2792_p1 }
  0x2f   : > { %p2798_p3 = pnand %p2796_p10, %p2793_p6 }
  0x31   : > { %2801 = shalt.err (!%p2798_p3)
}
  0x32   : > { %s2802_s25 = scalar_lea.vmem %s3033_s28, 512  ;;  %p2810_p12 = scmp.lt.s32.totalorder %s3033_s28, %s3033_s28 }
  0x33   : > { %p2803_p5 = scmp.ne.s32.totalorder %s3033_s28, %s2802_s25  ;;  %p2811_p0 = scmp.lt.s32.totalorder %s2802_s25, %s2802_s25 }
  0x35   : > { %p2805_p7 = pnand %p2803_p5, %p2763_p13  ;;  %p2812_p2 = por %p2811_p0, %p2810_p12 }
  0x37   : > { %p2806_p9 = pneg %p2805_p7 }
  0x39   : > { %p2813_p1 = pnand %p2812_p2, %p2806_p9 }
  0x3b   : > { %2816 = shalt.err (!%p2813_p1)
}
  0x3c   : > { %s2923_s7 = smov 64   ;;  %s2924_s8 = smov 4  }
  0x3d   : > { %2650 = dma.hbm_to_vmem [thread:$0]  (!%p3029_p11), %s3374_s2, 512, %s3033_s28, [#allocation6], %s2923_s7, %s2923_s7, %s2924_s8  }
  0x3e   : > { %s3088_s11 = sadd.s32 1, %s2917_s18   ;;  %s28_s13 = sadd.s32 1, %s2913_s17 }
  0x3f   : > { %s25_s12 = ssub.s32 %s2917_s18, %s3088_s11  ;;  %p35_p6 = scmp.ne.s32.totalorder %s2913_s17, %s2909_s16 }
  0x40   : > { %p26_p13 = scmp.eq.s32.totalorder %s25_s12, 0  ;;  %p36_p10 = scmp.eq.s32.totalorder %s2917_s18, 0 }
  0x41   : > { %p3384_p5 = scmp.eq.s32.totalorder %s2999_s19, 1  ;;  %p2661_p9 = scmp.lt.s32.totalorder %s2917_s18, 2 }
  0x42   : > { %s3097_s14 = scalar_select %p26_p13, %s2913_s17, %s28_s13  }
  0x43   : > { %p37_p3 = por %p36_p10, %p35_p6  ;;  %p3101_p7 = por %p3384_p5, %p35_p6 }
  0x44   : > { %s183_s26 = sand.u32 1, %s2913_s17   ;;  %s2390_s28 = sshll.u32 %s2917_s18, 7 }
  0x45   : > { %s3385_s20 = scalar_select %p3101_p7, 1, 0 }
  0x46   : > { %s2389_s24 = sshll.u32 %s183_s26, 3  ;;  %s3111_s30 = scalar_lea.hbm %s3372_s0, %s2390_s28 }
  0x47   : > { %s187_s5 = scalar_lea.vmem [#allocation2], %s2389_s24  ;;  %p3115_p11 = pnand %p2661_p9, %p37_p3 }
  0x48   : > { %s194_s6 = sshll.u32 %s187_s5, 4  ;;  %s184_s7 = scalar_lea.sflag [#allocation3], %s183_s26  ;;  %s3113_s6 = int_to_ptr.vmem [resolvable:$true] %s194_s6 }
  0x49   : > { %s2817_s8 = scalar_lea.hbm %s3111_s30, 128  ;;  %p2819_p0 = pneg %p3115_p11 }
  0x4a   : > { %p2818_p12 = scmp.ne.s32.totalorder %s3111_s30, %s2817_s8  ;;  %s2822_s12 = scalar_lea.hbm %s3372_s0, 256 }
  0x4b   : > { %p2823_p13 = scmp.lt.u32.totalorder %s3111_s30, %s3372_s0  ;;  %p2824_p6 = scmp.lt.u32.totalorder %s2822_s12, %s2817_s8 }
  0x4c   : > { %p2820_p2 = pnand %p2819_p0, %p2818_p12  ;;  %p2826_p3 = scmp.lt.u32.totalorder %s2817_s8, %s3111_s30 }
  0x4d   : > { %p2825_p10 = por %p2824_p6, %p2823_p13 }
  0x4e   : > { %p2821_p1 = pneg %p2820_p2 }
  0x4f   : > { %p2827_p5 = por %p2826_p3, %p2825_p10 }
  0x51   : > { %p2828_p9 = pnand %p2827_p5, %p2821_p1 }
  0x53   : > { %2831 = shalt.err (!%p2828_p9)
}
  0x54   : > { %s2832_s26 = scalar_lea.vmem %s3113_s6, 128  ;;  %s2925_s28 = smov [#allocation2]  }
  0x55   : > { %p2833_p12 = scmp.ne.s32.totalorder %s3113_s6, %s2832_s26  ;;  %s2837_s27 = sshll.u32 %s2925_s28, 4  ;;  %s2838_s27 = int_to_ptr.vmem [resolvable:$false] %s2837_s27 }
  0x56   : > { %s2839_s29 = scalar_lea.vmem %s2838_s27, 256  ;;  %p2840_p4 = scmp.lt.s32.totalorder %s3113_s6, %s2838_s27 }
  0x57   : > { %p2835_p2 = pnand %p2833_p12, %p2819_p0  ;;  %p2841_p13 = scmp.lt.s32.totalorder %s2839_s29, %s2832_s26 }
  0x59   : > { %p2836_p7 = pneg %p2835_p2  ;;  %p2842_p6 = por %p2841_p13, %p2840_p4 }
  0x5b   : > { %p2843_p10 = pnand %p2842_p6, %p2836_p7 }
  0x5d   : > { %2846 = shalt.err (!%p2843_p10)
}
  0x5e   : > { %2654 = dma.hbm_to_vmem [thread:$0]  (!%p3115_p11), %s3111_s30, 128, %s3113_s6, %s184_s7  }
  0x5f   : > { %203 = sbr.rel (%p3018_p8) target bundleno = 4810 (0x12ca), region = 36  ;;  %s3147_s5 = sand.u32 (!%p3018_p8), 1, %s2909_s16  }
  0x60   : > { %s2392_s8 = sshll.u32 (!%p3018_p8), %s3147_s5, 3  ;;  %s206_s9 = scalar_lea.sflag (!%p3018_p8), [#allocation3], %s3147_s5 }
  0x61   : > { %s209_s10 = scalar_lea.vmem (!%p3018_p8), [#allocation2], %s2392_s8  ;;  %p3387_p4 = scmp.ne.s32.totalorder (!%p3018_p8), %s3380_s21, 0 }
  0x66   : > { %2892 = dma.done.wait (%p3387_p4), %s206_s9, 128  }
  0x67   : > { %2894 = vsyncadd (%p3387_p4), %s206_s9, 4294967168  ;;  %p3388_p7 = scmp.eq.s32.totalorder %s2999_s19, 0 }
  0x69   : > { %2896 = dma.done.wait (%p3388_p7), [#allocation6], 1024   ;;  %p3389_p8 = pmov %p3388_p7 }
  0x6a   : > { %v2926_v0 = vmov 0.0|0.0   ;;  %vm2927_vm0 = vmmov 0   ;;  %v2928_v1 = vmov 0.0   ;;  %v243_v2 = vld [vmem:[#allocation5] sm:$0xff]  ;;  %v244_v3 = vld [vmem:[#allocation5 + $0x8] sm:$0xff]  ;;  %v245_v4 = vld [vmem:[#allocation5 + $0x10] sm:$0xff] }
  0x6b   : > { %2898 = vsyncadd (%p3389_p8), [#allocation6], 4294966272  ;;  %2626 = vmatprep.subr.bf16.mxu0 %v2926_v0  ;;  %2503 = vmatprep.mubr.msk.f32.mxu0 %vm2927_vm0, %v2928_v1  ;;  %v2627_v5 = vpack.c.bf16 %v244_v3, %v243_v2  ;;  %v246_v6 = vld [vmem:[#allocation5 + $0x18] sm:$0xff]  ;;  %vm247_vm1 = vcmask 261120   ;;  %s2929_s21 = smov 124   ;;  %s2930_s23 = smov 96  }
  0x6c   : > { %2506 = vmatprep.subr.mxu1 %v2928_v1  ;;  %2508 = vmatprep.mubr.msk.f32.mxu1 %vm2927_vm0, %v2928_v1  ;;  %v2630_v7 = vpack.c.bf16 %v246_v6, %v245_v4  ;;  %v242_v8 = vld [vmem:[%s209_s10] sm:$0xff]  ;;  %s2931_s30 = smov 92   ;;  %vm324_vm2 = vcmask 31744   ;;  %vm399_vm3 = vcmask 64512   ;;  %s2932_s6 = smov 60   ;;  %vm658_vm4 = vcmask 1043456  }
  0x6d   : > { %2628 = vmatpush3.bf16.msra.mxu0 %v2627_v5  ;;  %s2933_s25 = smov 64   ;;  %s2934_s7 = smov 88   ;;  %v654_v30 = vld [vmem:[#allocation7 + $0x4] sm:$0xf]  ;;  %v487_v39 = vld [vmem:[#allocation7] sm:$0xf] }
  0x6e   : > { %2629 = vmatprep.subr.bf16.mxu0 %v2926_v0  ;;  %s2935_s12 = smov 120   ;;  %s2936_s13 = smov 84   ;;  %v974_v2 = vld [vmem:[#allocation7 + $0x8] sm:$0xf] }
  0x6f   : > { %s2937_s24 = smov 116   ;;  %s2938_s26 = smov 56  }
  0x70   : > { %s2939_s28 = smov 52   ;;  %s2940_s27 = smov 112  }
  0x71   : > { %2631 = vmatpush3.bf16.msra.mxu0 %v2630_v7  ;;  %s2941_s29 = smov 80   ;;  %s2942_s9 = smov 76  }
  0x72   : > { %2516 = vmatprep.subr.mxu0 %v2928_v1  ;;  %s2943_s10 = smov 108   ;;  %p3390_p0 = scmp.ne.s32.totalorder %s3385_s20, 0 }
  0x74   : > { %2504 = vmatmul.mubr.msk.f32.vlgmr.msra.gmra.mrb[0].mxu0 %vm247_vm1, %v242_v8 }
  0x75   : > { %2518 = vmatprep.mubr.msk.f32.mxu0 %vm2927_vm0, %v2928_v1 }
 0x147   : > { %v3170_v9 = vpop.f32.mrb[0].mxu0 }
 0x148   : > { %488 = vrot.lane.b32.xlu1 %v3170_v9, %s2929_s21  ;;  %322 = vrot.lane.b32.xlu0 %v3170_v9, %s2930_s23  ;;  %v2505_v10 = vpop.f32.mrb[1].mxu0  ;;  %s2944_s21 = smov 48   ;;  %s2945_s23 = smov 44  }
 0x14c   : > { %490 = vrot.lane.b32.xlu0 %v3170_v9, %s2931_s30  ;;  %s2946_s30 = smov 104  }
 0x1ba   : > { %v323_v11 = vpop.permute.xlu0 %322  ;;  %v489_v13 = vpop.permute.xlu1 %488 }
 0x1bb   : > { %2507 = vmatpush3.xpose.msk.msra.mxu1 %vm324_vm2, %v323_v11 }
 0x1bc   : > { %2511 = vmatprep.subr.mxu1 %v2928_v1 }
 0x1be   : > { %2509 = vmatmul.mubr.msk.f32.vlgmr.msra.gmra.mrb[0].mxu1 %vm324_vm2, %v3170_v9  ;;  %v491_v12 = vpop.permute.xlu0 %490 }
 0x1bf   : > { %2517 = vmatpush3.xpose.msk.msra.mxu0 %vm324_vm2, %v491_v12  ;;  %2513 = vmatprep.mubr.msk.f32.mxu1 %vm2927_vm0, %v2928_v1 }
 0x1c0   : > { %2526 = vmatprep.subr.mxu0 %v2928_v1 }
 0x1c2   : > { %2519 = vmatmul.mubr.msk.f32.vlgmr.msra.gmra.mrb[2].mxu0 %vm324_vm2, %v489_v13 }
 0x1c3   : > { %2528 = vmatprep.mubr.msk.f32.mxu0 %vm2927_vm0, %v2928_v1  ;;  %2527 = vmatpush3.msk.msra.mxu0 %vm658_vm4, %v654_v30 }
 0x1c4   : > { %2536 = vmatprep.subr.mxu0 %v2928_v1 }
 0x291   : > { %v395_v14 = vpop.f32.mrb[0].mxu1 }
 0x292   : > { %v2510_v15 = vpop.f32.mrb[1].mxu1  ;;  %v400_v16 = vsel %vm399_vm3, %v395_v14, -inf }
 0x293   : > { %401 = vmax.xlane.f32.xlu1 %v400_v16 }
 0x295   : > { %v562_v17 = vpop.f32.mrb[2].mxu0 }
 0x296   : > { %v2520_v18 = vpop.f32.mrb[3].mxu0  ;;  %v566_v19 = vsel %vm399_vm3, %v562_v17, -inf }
 0x297   : > { %567 = vmax.xlane.f32.xlu0 %v566_v19 }
 0x320   : > { %v402_v20 = vpop.xlane.xlu1 %401 }
 0x321   : > { %v403_v21 = vsub.f32 %v395_v14, %v402_v20 }
 0x323   : > { %v404_v22 = vmul.f32 1.442695, %v403_v21 }
 0x324   : > { %v568_v23 = vpop.xlane.xlu0 %567 }
 0x325   : > { %2729 = vpow2.f32 %v404_v22  ;;  %v569_v24 = vsub.f32 %v562_v17, %v568_v23  ;;  %v1218_v23 = vld [vmem:[#allocation7 + $0xc] sm:$0xf] }
 0x327   : > { %v570_v25 = vmul.f32 1.442695, %v569_v24 }
 0x329   : > { %2731 = vpow2.f32 %v570_v25 }
 0x32f   : > { %v2730_v26 = vpop.eup %2729 }
 0x330   : > { %v406_v27 = vsel %vm399_vm3, %v2730_v26, 0.0 }
 0x331   : > { %407 = vadd.xlane.f32.xlu0 %v406_v27 }
 0x333   : > { %v2732_v28 = vpop.eup %2731 }
 0x334   : > { %v572_v29 = vsel %vm399_vm3, %v2732_v28, 0.0 }
 0x335   : > { %573 = vadd.xlane.f32.xlu1 %v572_v29 }
 0x346   : > { %577 = vrot.lane.b32.xlu1 %v3170_v9, %s2932_s6  ;;  %s2947_s6 = smov 72  }
 0x347   : > { %411 = vrot.lane.b32.xlu0 %v3170_v9, %s2933_s25  ;;  %s2948_s25 = smov 68  }
 0x34a   : > { %810 = vrot.lane.b32.xlu1 %v3170_v9, %s2934_s7  ;;  %s2949_s7 = smov 100  }
 0x34b   : > { %808 = vrot.lane.b32.xlu0 %v3170_v9, %s2935_s12  ;;  %s2950_s12 = smov 40  }
 0x3be   : > { %v408_v31 = vpop.xlane.xlu0 %407 }
 0x3bf   : > { %2733 = vrcp.f32 %v408_v31 }
 0x3c2   : > { %v574_v32 = vpop.xlane.xlu1 %573  ;;  %v412_v33 = vpop.permute.xlu0 %411 }
 0x3c3   : > { %2735 = vrcp.f32 %v574_v32  ;;  %2512 = vmatpush3.msra.mxu1 %v412_v33 }
 0x3c4   : > { %2521 = vmatprep.subr.mxu1 %v2928_v1 }
 0x3c6   : > { %v578_v36 = vpop.permute.xlu1 %577  ;;  %v809_v45 = vpop.permute.xlu0 %808 }
 0x3c9   : > { %v2734_v34 = vpop.eup %2733 }
 0x3ca   : > { %v410_v35 = vmul.f32 %v2734_v34, %v2730_v26  ;;  %v811_v43 = vpop.permute.xlu1 %810 }
 0x3cc   : > { %2514 = vmatmul.mubr.msk.f32.vlgmr.msra.gmra.mrb[2].mxu1 %vm399_vm3, %v410_v35 }
 0x3cd   : > { %v2736_v37 = vpop.eup %2735  ;;  %2522 = vmatpush3.msra.mxu1 %v578_v36  ;;  %2523 = vmatprep.mubr.msk.f32.mxu1 %vm2927_vm0, %v2928_v1 }
 0x3ce   : > { %v576_v38 = vmul.f32 %v2736_v37, %v2732_v28  ;;  %2531 = vmatprep.subr.mxu1 %v2928_v1 }
 0x3d0   : > { %2524 = vmatmul.mubr.msk.f32.vlgmr.msra.gmra.mrb[4].mxu1 %vm399_vm3, %v576_v38 }
 0x3d1   : > { %2533 = vmatprep.mubr.msk.f32.mxu1 %vm2927_vm0, %v2928_v1  ;;  %2532 = vmatpush3.msk.msra.mxu1 %vm658_vm4, %v487_v39 }
 0x3d2   : > { %2541 = vmatprep.subr.mxu1 %v2928_v1 }
 0x49f   : > { %v483_v40 = vpop.f32.mrb[2].mxu1 }
 0x4a0   : > { %v2515_v41 = vpop.f32.mrb[3].mxu1  ;;  %2534 = vmatmul.mubr.msk.f32.vlgmr.msra.gmra.mrb[6].mxu1 %vm324_vm2, %v483_v40 }
 0x4a1   : > { %2543 = vmatprep.mubr.msk.f32.mxu1 %vm2927_vm0, %v2928_v1 }
 0x4a3   : > { %v649_v42 = vpop.f32.mrb[4].mxu1 }
 0x4a4   : > { %v2525_v44 = vpop.f32.mrb[5].mxu1  ;;  %2529 = vmatmul.mubr.msk.f32.vlgmr.msra.gmra.mrb[4].mxu0 %vm324_vm2, %v649_v42 }
 0x4a5   : > { %2537 = vmatpush3.xpose.msk.msra.mxu0 %vm324_vm2, %v811_v43  ;;  %2538 = vmatprep.mubr.msk.f32.mxu0 %vm2927_vm0, %v2928_v1  ;;  %v1462_v43 = vld [vmem:[#allocation7 + $0x10] sm:$0xf] }
 0x4a6   : > { %2546 = vmatprep.subr.mxu0 %v2928_v1 }
 0x4a8   : > { %2539 = vmatmul.mubr.msk.f32.vlgmr.msra.gmra.mrb[6].mxu0 %vm324_vm2, %v809_v45 }
 0x4a9   : > { %2548 = vmatprep.mubr.msk.f32.mxu0 %vm2927_vm0, %v2928_v1  ;;  %2547 = vmatpush3.msk.msra.mxu0 %vm658_vm4, %v974_v2 }
 0x4aa   : > { %2556 = vmatprep.subr.mxu0 %v2928_v1 }
 0x573   : > { %v804_v46 = vpop.f32.mrb[6].mxu1 }
 0x574   : > { %v2535_v47 = vpop.f32.mrb[7].mxu1 }
 0x577   : > { %v728_v48 = vpop.f32.mrb[4].mxu0 }
 0x578   : > { %v805_v49 = vadd.f32 %v804_v46, %v728_v48  ;;  %v2530_v50 = vpop.f32.mrb[5].mxu0 }
 0x57b   : > { %v882_v51 = vpop.f32.mrb[6].mxu0 }
 0x57c   : > { %v2540_v52 = vpop.f32.mrb[7].mxu0  ;;  %v886_v53 = vsel %vm399_vm3, %v882_v51, -inf }
 0x57d   : > { %887 = vmax.xlane.f32.xlu1 %v886_v53 }
 0x58e   : > { %1054 = vrot.lane.b32.xlu1 %v3170_v9, %s2936_s13  ;;  %s2951_s13 = smov 36  }
 0x592   : > { %1052 = vrot.lane.b32.xlu1 %v3170_v9, %s2937_s24 }
 0x60a   : > { %v888_v54 = vpop.xlane.xlu1 %887 }
 0x60b   : > { %v889_v55 = vsub.f32 %v882_v51, %v888_v54 }
 0x60d   : > { %v890_v56 = vmul.f32 1.442695, %v889_v55 }
 0x60e   : > { %v1055_v62 = vpop.permute.xlu1 %1054 }
 0x60f   : > { %2737 = vpow2.f32 %v890_v56 }
 0x612   : > { %v1053_v0 = vpop.permute.xlu1 %1052 }
 0x619   : > { %v2738_v57 = vpop.eup %2737 }
 0x61a   : > { %v892_v58 = vsel %vm399_vm3, %v2738_v57, 0.0 }
 0x61b   : > { %893 = vadd.xlane.f32.xlu0 %v892_v58 }
 0x631   : > { %897 = vrot.lane.b32.xlu0 %v3170_v9, %s2938_s26 }
 0x6a8   : > { %v894_v59 = vpop.xlane.xlu0 %893 }
 0x6a9   : > { %2739 = vrcp.f32 %v894_v59 }
 0x6ac   : > { %v898_v60 = vpop.permute.xlu0 %897 }
 0x6ad   : > { %2542 = vmatpush3.msra.mxu1 %v898_v60 }
 0x6ae   : > { %2551 = vmatprep.subr.mxu1 %v2928_v1 }
 0x6b3   : > { %v2740_v61 = vpop.eup %2739 }
 0x6b4   : > { %v896_v63 = vmul.f32 %v2740_v61, %v2738_v57 }
 0x6b6   : > { %2544 = vmatmul.mubr.msk.f32.vlgmr.msra.gmra.mrb[8].mxu1 %vm399_vm3, %v896_v63  ;;  %v1706_v63 = vld [vmem:[#allocation7 + $0x14] sm:$0xf] }
 0x6b7   : > { %2552 = vmatpush3.xpose.msk.msra.mxu1 %vm324_vm2, %v1055_v62  ;;  %2553 = vmatprep.mubr.msk.f32.mxu1 %vm2927_vm0, %v2928_v1 }
 0x6b8   : > { %2561 = vmatprep.subr.mxu1 %v2928_v1 }
 0x6ba   : > { %2554 = vmatmul.mubr.msk.f32.vlgmr.msra.gmra.mrb[10].mxu1 %vm324_vm2, %v1053_v0 }
 0x6bb   : > { %2563 = vmatprep.mubr.msk.f32.mxu1 %vm2927_vm0, %v2928_v1  ;;  %2562 = vmatpush3.msk.msra.mxu1 %vm658_vm4, %v1218_v23 }
 0x6bc   : > { %2571 = vmatprep.subr.mxu1 %v2928_v1 }
 0x789   : > { %v969_v3 = vpop.f32.mrb[8].mxu1 }
 0x78a   : > { %v2545_v4 = vpop.f32.mrb[9].mxu1  ;;  %2549 = vmatmul.mubr.msk.f32.vlgmr.msra.gmra.mrb[8].mxu0 %vm324_vm2, %v969_v3 }
 0x78b   : > { %2558 = vmatprep.mubr.msk.f32.mxu0 %vm2927_vm0, %v2928_v1 }
 0x78d   : > { %v1126_v5 = vpop.f32.mrb[10].mxu1 }
 0x78e   : > { %v2555_v6 = vpop.f32.mrb[11].mxu1  ;;  %v1130_v7 = vsel %vm399_vm3, %v1126_v5, -inf }
 0x78f   : > { %1131 = vmax.xlane.f32.xlu0 %v1130_v7 }
 0x7a5   : > { %1141 = vrot.lane.b32.xlu0 %v3170_v9, %s2939_s28  ;;  %s2439_s28 = sshll.u32 %s2999_s19, 7 }
 0x7a9   : > { %1296 = vrot.lane.b32.xlu0 %v3170_v9, %s2940_s27  ;;  %s241_s27 = scalar_lea.vmem [#allocation8], %s2392_s8  ;;  %s2952_s8 = smov [#allocation8]  }
 0x81c   : > { %v1132_v8 = vpop.xlane.xlu0 %1131 }
 0x81d   : > { %v1133_v10 = vsub.f32 %v1126_v5, %v1132_v8 }
 0x81f   : > { %v1134_v11 = vmul.f32 1.442695, %v1133_v10 }
 0x820   : > { %v1142_v12 = vpop.permute.xlu0 %1141 }
 0x821   : > { %2741 = vpow2.f32 %v1134_v11  ;;  %2557 = vmatpush3.msra.mxu0 %v1142_v12 }
 0x822   : > { %2566 = vmatprep.subr.mxu0 %v2928_v1 }
 0x824   : > { %v1297_v22 = vpop.permute.xlu0 %1296 }
 0x82b   : > { %v2742_v13 = vpop.eup %2741 }
 0x82c   : > { %v1136_v14 = vsel %vm399_vm3, %v2742_v13, 0.0 }
 0x82d   : > { %1137 = vadd.xlane.f32.xlu1 %v1136_v14 }
 0x83e   : > { %1298 = vrot.lane.b32.xlu1 %v3170_v9, %s2941_s29  ;;  %s2295_s29 = sshll.u32 %s241_s27, 4  ;;  %s3329_s29 = int_to_ptr.vmem [resolvable:$true] %s2295_s29 }
 0x83f   : > { %s2847_s19 = scalar_lea.vmem %s3329_s29, 128 }
 0x840   : > { %p2848_p11 = scmp.ne.s32.totalorder %s3329_s29, %s2847_s19 }
 0x842   : > { %p2849_p1 = pnand %p2848_p11, %p3390_p0 }
 0x844   : > { %p2850_p3 = pneg %p2849_p1 }
 0x85d   : > { %v1047_v15 = vpop.f32.mrb[8].mxu0 }
 0x85e   : > { %v1051_v16 = vadd.f32 %v1047_v15, %v805_v49  ;;  %v2550_v17 = vpop.f32.mrb[9].mxu0 }
 0x8ba   : > { %v1138_v18 = vpop.xlane.xlu1 %1137 }
 0x8bb   : > { %2743 = vrcp.f32 %v1138_v18 }
 0x8be   : > { %v1299_v21 = vpop.permute.xlu1 %1298 }
 0x8c5   : > { %v2744_v19 = vpop.eup %2743 }
 0x8c6   : > { %v1140_v20 = vmul.f32 %v2744_v19, %v2742_v13 }
 0x8c8   : > { %2559 = vmatmul.mubr.msk.f32.vlgmr.msra.gmra.mrb[10].mxu0 %vm399_vm3, %v1140_v20 }
 0x8c9   : > { %2567 = vmatpush3.xpose.msk.msra.mxu0 %vm324_vm2, %v1299_v21  ;;  %2568 = vmatprep.mubr.msk.f32.mxu0 %vm2927_vm0, %v2928_v1  ;;  %v1950_v21 = vld [vmem:[#allocation7 + $0x18] sm:$0xf] }
 0x8ca   : > { %2576 = vmatprep.subr.mxu0 %v2928_v1 }
 0x8cc   : > { %2569 = vmatmul.mubr.msk.f32.vlgmr.msra.gmra.mrb[12].mxu0 %vm324_vm2, %v1297_v22 }
 0x8cd   : > { %2578 = vmatprep.mubr.msk.f32.mxu0 %vm2927_vm0, %v2928_v1  ;;  %2577 = vmatpush3.msk.msra.mxu0 %vm658_vm4, %v1462_v43 }
 0x8ce   : > { %2586 = vmatprep.subr.mxu0 %v2928_v1 }
 0x99b   : > { %v1213_v24 = vpop.f32.mrb[10].mxu0 }
 0x99c   : > { %v2560_v25 = vpop.f32.mrb[11].mxu0  ;;  %2564 = vmatmul.mubr.msk.f32.vlgmr.msra.gmra.mrb[12].mxu1 %vm324_vm2, %v1213_v24 }
 0x99d   : > { %2573 = vmatprep.mubr.msk.f32.mxu1 %vm2927_vm0, %v2928_v1 }
 0x99f   : > { %v1370_v26 = vpop.f32.mrb[12].mxu0 }
 0x9a0   : > { %v2570_v27 = vpop.f32.mrb[13].mxu0  ;;  %v1374_v28 = vsel %vm399_vm3, %v1370_v26, -inf }
 0x9a1   : > { %1375 = vmax.xlane.f32.xlu1 %v1374_v28 }
 0x9b2   : > { %1542 = vrot.lane.b32.xlu1 %v3170_v9, %s2942_s9 }
 0x9b6   : > { %1540 = vrot.lane.b32.xlu1 %v3170_v9, %s2943_s10 }
 0xa2e   : > { %v1376_v29 = vpop.xlane.xlu1 %1375 }
 0xa2f   : > { %v1377_v30 = vsub.f32 %v1370_v26, %v1376_v29 }
 0xa31   : > { %v1378_v31 = vmul.f32 1.442695, %v1377_v30 }
 0xa32   : > { %v1543_v40 = vpop.permute.xlu1 %1542 }
 0xa33   : > { %2745 = vpow2.f32 %v1378_v31 }
 0xa36   : > { %v1541_v42 = vpop.permute.xlu1 %1540 }
 0xa3d   : > { %v2746_v32 = vpop.eup %2745 }
 0xa3e   : > { %v1380_v33 = vsel %vm399_vm3, %v2746_v32, 0.0 }
 0xa3f   : > { %1381 = vadd.xlane.f32.xlu0 %v1380_v33 }
 0xa55   : > { %1385 = vrot.lane.b32.xlu0 %v3170_v9, %s2944_s21  ;;  %s3327_s21 = scalar_lea.hbm %s3376_s4, %s2439_s28 }
 0xa6f   : > { %v1291_v34 = vpop.f32.mrb[12].mxu1 }
 0xa70   : > { %v1295_v35 = vadd.f32 %v1291_v34, %v1051_v16  ;;  %v2565_v36 = vpop.f32.mrb[13].mxu1 }
 0xacc   : > { %v1382_v37 = vpop.xlane.xlu0 %1381 }
 0xacd   : > { %2747 = vrcp.f32 %v1382_v37 }
 0xad0   : > { %v1386_v38 = vpop.permute.xlu0 %1385 }
 0xad1   : > { %2572 = vmatpush3.msra.mxu1 %v1386_v38 }
 0xad2   : > { %2581 = vmatprep.subr.mxu1 %v2928_v1 }
 0xad7   : > { %v2748_v39 = vpop.eup %2747 }
 0xad8   : > { %v1384_v41 = vmul.f32 %v2748_v39, %v2746_v32 }
 0xada   : > { %2574 = vmatmul.mubr.msk.f32.vlgmr.msra.gmra.mrb[14].mxu1 %vm399_vm3, %v1384_v41  ;;  %v2437_v41 = vld [vmem:[%s3375_s3] ss:$0 sm:$0xff] }
 0xadb   : > { %2582 = vmatpush3.xpose.msk.msra.mxu1 %vm324_vm2, %v1543_v40  ;;  %2583 = vmatprep.mubr.msk.f32.mxu1 %vm2927_vm0, %v2928_v1 }
 0xadc   : > { %2591 = vmatprep.subr.mxu1 %v2928_v1 }
 0xade   : > { %2584 = vmatmul.mubr.msk.f32.vlgmr.msra.gmra.mrb[16].mxu1 %vm324_vm2, %v1541_v42 }
 0xadf   : > { %2593 = vmatprep.mubr.msk.f32.mxu1 %vm2927_vm0, %v2928_v1  ;;  %2592 = vmatpush3.msk.msra.mxu1 %vm658_vm4, %v1706_v63 }
 0xae0   : > { %2601 = vmatprep.subr.mxu1 %v2928_v1 }
 0xbad   : > { %v1457_v44 = vpop.f32.mrb[14].mxu1 }
 0xbae   : > { %v2575_v45 = vpop.f32.mrb[15].mxu1  ;;  %2579 = vmatmul.mubr.msk.f32.vlgmr.msra.gmra.mrb[14].mxu0 %vm324_vm2, %v1457_v44 }
 0xbaf   : > { %2588 = vmatprep.mubr.msk.f32.mxu0 %vm2927_vm0, %v2928_v1 }
 0xbb1   : > { %v1614_v46 = vpop.f32.mrb[16].mxu1 }
 0xbb2   : > { %v2585_v47 = vpop.f32.mrb[17].mxu1  ;;  %v1618_v48 = vsel %vm399_vm3, %v1614_v46, -inf }
 0xbb3   : > { %1619 = vmax.xlane.f32.xlu0 %v1618_v48 }
 0xbc9   : > { %1629 = vrot.lane.b32.xlu0 %v3170_v9, %s2945_s23  ;;  %s2282_s23 = scalar_lea.sflag [#allocation4], %s3147_s5 }
 0xbcd   : > { %1784 = vrot.lane.b32.xlu0 %v3170_v9, %s2946_s30  ;;  %s2851_s30 = sshll.u32 %s2952_s8, 4  ;;  %s2852_s30 = int_to_ptr.vmem [resolvable:$false] %s2851_s30 }
 0xbce   : > { %p2854_p5 = scmp.lt.s32.totalorder %s3329_s29, %s2852_s30 }
 0xc40   : > { %v1620_v49 = vpop.xlane.xlu0 %1619 }
 0xc41   : > { %v1621_v50 = vsub.f32 %v1614_v46, %v1620_v49 }
 0xc43   : > { %v1622_v51 = vmul.f32 1.442695, %v1621_v50 }
 0xc44   : > { %v1630_v52 = vpop.permute.xlu0 %1629 }
 0xc45   : > { %2749 = vpow2.f32 %v1622_v51  ;;  %2587 = vmatpush3.msra.mxu0 %v1630_v52 }
 0xc46   : > { %2596 = vmatprep.subr.mxu0 %v2928_v1 }
 0xc48   : > { %v1785_v62 = vpop.permute.xlu0 %1784 }
 0xc4f   : > { %v2750_v53 = vpop.eup %2749 }
 0xc50   : > { %v1624_v54 = vsel %vm399_vm3, %v2750_v53, 0.0 }
 0xc51   : > { %1625 = vadd.xlane.f32.xlu1 %v1624_v54 }
 0xc62   : > { %1786 = vrot.lane.b32.xlu1 %v3170_v9, %s2947_s6  ;;  %s2853_s6 = scalar_lea.vmem %s2852_s30, 256 }
 0xc63   : > { %p2855_p9 = scmp.lt.s32.totalorder %s2853_s6, %s2847_s19 }
 0xc65   : > { %p2856_p12 = por %p2855_p9, %p2854_p5 }
 0xc67   : > { %p2857_p2 = pnand %p2856_p12, %p2850_p3 }
 0xc81   : > { %v1535_v55 = vpop.f32.mrb[14].mxu0 }
 0xc82   : > { %v1539_v56 = vadd.f32 %v1535_v55, %v1295_v35  ;;  %v2580_v57 = vpop.f32.mrb[15].mxu0 }
 0xcde   : > { %v1626_v58 = vpop.xlane.xlu1 %1625 }
 0xcdf   : > { %2751 = vrcp.f32 %v1626_v58 }
 0xce2   : > { %v1787_v61 = vpop.permute.xlu1 %1786 }
 0xce9   : > { %v2752_v59 = vpop.eup %2751 }
 0xcea   : > { %v1628_v60 = vmul.f32 %v2752_v59, %v2750_v53 }
 0xcec   : > { %2589 = vmatmul.mubr.msk.f32.vlgmr.msra.gmra.mrb[16].mxu0 %vm399_vm3, %v1628_v60 }
 0xced   : > { %2597 = vmatpush3.xpose.msk.msra.mxu0 %vm324_vm2, %v1787_v61  ;;  %2598 = vmatprep.mubr.msk.f32.mxu0 %vm2927_vm0, %v2928_v1 }
 0xcee   : > { %2606 = vmatprep.subr.mxu0 %v2928_v1 }
 0xcf0   : > { %2599 = vmatmul.mubr.msk.f32.vlgmr.msra.gmra.mrb[18].mxu0 %vm324_vm2, %v1785_v62 }
 0xcf1   : > { %2608 = vmatprep.mubr.msk.f32.mxu0 %vm2927_vm0, %v2928_v1  ;;  %2607 = vmatpush3.msk.msra.mxu0 %vm658_vm4, %v1950_v21 }
 0xcf2   : > { %2616 = vmatprep.subr.mxu0 %v2928_v1 }
 0xdbf   : > { %v1701_v0 = vpop.f32.mrb[16].mxu0 }
 0xdc0   : > { %v2590_v2 = vpop.f32.mrb[17].mxu0  ;;  %2594 = vmatmul.mubr.msk.f32.vlgmr.msra.gmra.mrb[18].mxu1 %vm324_vm2, %v1701_v0 }
 0xdc1   : > { %2603 = vmatprep.mubr.msk.f32.mxu1 %vm2927_vm0, %v2928_v1 }
 0xdc3   : > { %v1858_v3 = vpop.f32.mrb[18].mxu0 }
 0xdc4   : > { %v2600_v4 = vpop.f32.mrb[19].mxu0  ;;  %v1862_v5 = vsel %vm399_vm3, %v1858_v3, -inf }
 0xdc5   : > { %1863 = vmax.xlane.f32.xlu1 %v1862_v5 }
 0xdd6   : > { %2030 = vrot.lane.b32.xlu1 %v3170_v9, %s2948_s25 }
 0xdda   : > { %2028 = vrot.lane.b32.xlu1 %v3170_v9, %s2949_s7 }
 0xe52   : > { %v1864_v6 = vpop.xlane.xlu1 %1863 }
 0xe53   : > { %v1865_v7 = vsub.f32 %v1858_v3, %v1864_v6 }
 0xe55   : > { %v1866_v8 = vmul.f32 1.442695, %v1865_v7 }
 0xe56   : > { %v2031_v18 = vpop.permute.xlu1 %2030 }
 0xe57   : > { %2753 = vpow2.f32 %v1866_v8 }
 0xe5a   : > { %v2029_v20 = vpop.permute.xlu1 %2028 }
 0xe61   : > { %v2754_v10 = vpop.eup %2753 }
 0xe62   : > { %v1868_v11 = vsel %vm399_vm3, %v2754_v10, 0.0 }
 0xe63   : > { %1869 = vadd.xlane.f32.xlu0 %v1868_v11 }
 0xe79   : > { %1873 = vrot.lane.b32.xlu0 %v3170_v9, %s2950_s12 }
 0xe93   : > { %v1779_v12 = vpop.f32.mrb[18].mxu1 }
 0xe94   : > { %v1783_v13 = vadd.f32 %v1779_v12, %v1539_v56  ;;  %v2595_v14 = vpop.f32.mrb[19].mxu1 }
 0xef0   : > { %v1870_v15 = vpop.xlane.xlu0 %1869 }
 0xef1   : > { %2755 = vrcp.f32 %v1870_v15 }
 0xef4   : > { %v1874_v16 = vpop.permute.xlu0 %1873 }
 0xef5   : > { %2602 = vmatpush3.msra.mxu1 %v1874_v16 }
 0xef6   : > { %2611 = vmatprep.subr.mxu1 %v2928_v1 }
 0xefb   : > { %v2756_v17 = vpop.eup %2755 }
 0xefc   : > { %v1872_v19 = vmul.f32 %v2756_v17, %v2754_v10 }
 0xefe   : > { %2604 = vmatmul.mubr.msk.f32.vlgmr.msra.gmra.mrb[20].mxu1 %vm399_vm3, %v1872_v19 }
 0xeff   : > { %2612 = vmatpush3.xpose.msk.msra.mxu1 %vm324_vm2, %v2031_v18  ;;  %2613 = vmatprep.mubr.msk.f32.mxu1 %vm2927_vm0, %v2928_v1 }
 0xf00   : > { %2621 = vmatprep.subr.mxu1 %v2928_v1 }
 0xf02   : > { %2614 = vmatmul.mubr.msk.f32.vlgmr.msra.gmra.mrb[22].mxu1 %vm324_vm2, %v2029_v20 }
 0xf03   : > { %2623 = vmatprep.mubr.msk.f32.mxu1 %vm2927_vm0, %v2928_v1 }
 0xfd1   : > { %v1945_v22 = vpop.f32.mrb[20].mxu1 }
 0xfd2   : > { %v2605_v23 = vpop.f32.mrb[21].mxu1  ;;  %2609 = vmatmul.mubr.msk.f32.vlgmr.msra.gmra.mrb[20].mxu0 %vm324_vm2, %v1945_v22 }
 0xfd3   : > { %2618 = vmatprep.mubr.msk.f32.mxu0 %vm2927_vm0, %v2928_v1  ;;  %v2194_v1 = vld [vmem:[#allocation7 + $0x1c] sm:$0xf] }
 0xfd4   : > { %2622 = vmatpush3.msk.msra.mxu1 %vm658_vm4, %v2194_v1 }
 0xfd5   : > { %v2102_v24 = vpop.f32.mrb[22].mxu1 }
 0xfd6   : > { %v2615_v25 = vpop.f32.mrb[23].mxu1  ;;  %v2106_v26 = vsel %vm399_vm3, %v2102_v24, -inf }
 0xfd7   : > { %2107 = vmax.xlane.f32.xlu0 %v2106_v26 }
 0xfed   : > { %2117 = vrot.lane.b32.xlu0 %v3170_v9, %s2951_s13 }
0x1064   : > { %v2108_v27 = vpop.xlane.xlu0 %2107 }
0x1065   : > { %v2109_v28 = vsub.f32 %v2102_v24, %v2108_v27 }
0x1067   : > { %v2110_v29 = vmul.f32 1.442695, %v2109_v28 }
0x1068   : > { %v2118_v30 = vpop.permute.xlu0 %2117 }
0x1069   : > { %2757 = vpow2.f32 %v2110_v29  ;;  %2617 = vmatpush3.msra.mxu0 %v2118_v30 }
0x1073   : > { %v2758_v31 = vpop.eup %2757 }
0x1074   : > { %v2112_v32 = vsel %vm399_vm3, %v2758_v31, 0.0 }
0x1075   : > { %2113 = vadd.xlane.f32.xlu1 %v2112_v32 }
0x10a5   : > { %v2023_v33 = vpop.f32.mrb[20].mxu0 }
0x10a6   : > { %v2027_v34 = vadd.f32 %v2023_v33, %v1783_v13  ;;  %v2610_v35 = vpop.f32.mrb[21].mxu0 }
0x1102   : > { %v2114_v36 = vpop.xlane.xlu1 %2113 }
0x1103   : > { %2759 = vrcp.f32 %v2114_v36 }
0x110d   : > { %v2760_v9 = vpop.eup %2759 }
0x110e   : > { %v2116_v37 = vmul.f32 %v2760_v9, %v2758_v31 }
0x1110   : > { %2619 = vmatmul.mubr.msk.f32.vlgmr.msra.gmra.mrb[22].mxu0 %vm399_vm3, %v2116_v37 }
0x11e3   : > { %v2189_v38 = vpop.f32.mrb[22].mxu0 }
0x11e4   : > { %v2620_v39 = vpop.f32.mrb[23].mxu0  ;;  %2624 = vmatmul.mubr.msk.f32.vlgmr.msra.gmra.mrb[24].mxu1 %vm324_vm2, %v2189_v38 }
0x12b7   : > { %v2267_v40 = vpop.f32.mrb[24].mxu1 }
0x12b8   : > { %v2271_v42 = vadd.f32 %v2267_v40, %v2027_v34  ;;  %v2625_v43 = vpop.f32.mrb[25].mxu1 }
0x12ba   : > { %v2279_v44 = vadd.f32 %v2437_v41, %v2271_v42 }
0x12bc   : > { %2280 = vst.msk [vmem:[%s241_s27] sm:$0xff] %vm247_vm1, %v2279_v44 }
0x12bd   : > { %2860 = shalt.err (!%p2857_p2)
}
0x12be   : > { %s2861_s5 = scalar_lea.hbm %s3327_s21, 128  ;;  %s2865_s12 = scalar_lea.hbm %s3376_s4, 256 }
0x12bf   : > { %p2862_p13 = scmp.ne.s32.totalorder %s3327_s21, %s2861_s5  ;;  %p2866_p4 = scmp.lt.u32.totalorder %s3327_s21, %s3376_s4 }
0x12c0   : > { %p2867_p7 = scmp.lt.u32.totalorder %s2865_s12, %s2861_s5  ;;  %p2869_p11 = scmp.lt.u32.totalorder %s2861_s5, %s3327_s21 }
0x12c1   : > { %p2863_p6 = pnand %p2862_p13, %p3390_p0 }
0x12c2   : > { %p2868_p8 = por %p2867_p7, %p2866_p4 }
0x12c3   : > { %p2864_p10 = pneg %p2863_p6 }
0x12c4   : > { %p2870_p1 = por %p2869_p11, %p2868_p8 }
0x12c6   : > { %p2871_p3 = pnand %p2870_p1, %p2864_p10 }
0x12c8   : > { %2874 = shalt.err (!%p2871_p3)
}
0x12c9   : > { %2642 = dma.vmem_to_hbm [thread:$0]  (%p3390_p0), %s3329_s29, 128, %s3327_s21, %s2282_s23  }
0x12ca PF: > { %s2307_s26 = sand.u32 1, %s2905_s15   ;;  %p3391_p5 = scmp.ne.s32.totalorder %s3381_s22, 0 }
0x12cb   : > { %p3392_p9 = scmp.ge.s32.totalorder %s2917_s18, 2  ;;  %s2308_s28 = scalar_lea.sflag [#allocation4], %s2307_s26 }
0x12cd   : > { %p2656_p12 = pnand %p3392_p9, %p3391_p5 }
0x12cf   : > { %2900 = dma.done.wait (!%p2656_p12), %s2308_s28, 128  }
0x12d0   : > { %2902 = vsyncadd (!%p2656_p12), %s2308_s28, 4294967168  ;;  %p18_p2 = scmp.ge.s32.totalorder %s3088_s11, 4   ;;  %s3393_s15 = smov %s2909_s16 }
0x12d1   : > { %s3394_s16 = smov %s2913_s17  ;;  %s3395_s17 = smov %s3097_s14 }
0x12d2   : > { %s3396_s18 = smov %s3088_s11  ;;  %20 = sbr.rel (!%p18_p2) target bundleno = 6 (0x6), region = 96 }
0x12d9   :  { %2313 = vsyncpa [#allocation3], 1 }
0x12da   :  { %2315 = vsyncpa [#allocation3 + $0x1], 1 }
0x12db   :  { %2316 = vsyncpa [#allocation6], 1 }
0x12dc   :  { %2317 = vsyncpa [#allocation4], 1 }
0x12dd   :  { %2319 = vsyncpa [#allocation4 + $0x1], 1 }

// kernel: tpu_custom_call.1
= control target key start
LH: loop header
LB: loop body
LE: loop exit
PB: predicated region body
PF: predicated region fallthrough
CT: control target
= control target key end

     0   :  { %9 = vsyncpa [#allocation3], 0  ;;  %s3372_s0 = inlined_call_operand.hbm [shape: f32[2,8,32], index: 0, kind: input, shape index: {}]   ;;  %s3373_s1 = inlined_call_operand.hbm [shape: f32[32,96], index: 1, kind: input, shape index: {}]   ;;  %s3374_s2 = inlined_call_operand.hbm [shape: f32[8,4,32], index: 2, kind: input, shape index: {}]   ;;  %s3375_s3 = inlined_call_operand.vmem [shape: f32[1,32], index: 3, kind: input, shape index: {}]   ;;  %s3376_s4 = inlined_call_operand.hbm [shape: f32[2,8,32], index: 4, kind: output, shape index: {}]  }
   0x1   :  { %11 = vsyncpa [#allocation3 + $0x1], 0 }
   0x2   :  { %12 = vsyncpa [#allocation6], 0 }
   0x3   :  { %13 = vsyncpa [#allocation4], 0 }
   0x4   :  { %15 = vsyncpa [#allocation4 + $0x1], 0  ;;  %s2978_s15 = smov 0   ;;  %s2980_s16 = smov 0  }
   0x5   :  { %s2982_s17 = smov 0   ;;  %s2984_s18 = smov 0  }
   0x6 LB: > { %s2999_s19 = sadd.s32 4294967295, %s2917_s18   ;;  %s2384_s20 = sadd.s32 4294967294, %s2917_s18   ;;  %s2917_s18 = sphi %s2984_s18, %s3396_s18   ;;  %s2913_s17 = sphi %s2982_s17, %s3395_s17   ;;  %s2909_s16 = sphi %s2980_s16, %s3394_s16   ;;  %s2905_s15 = sphi %s2978_s15, %s3393_s15  }
   0x7   : > { %p41_p0 = scmp.ne.s32.totalorder %s2909_s16, %s2905_s15  ;;  %p3377_p1 = scmp.eq.s32.totalorder %s2999_s19, 0 }
   0x8   : > { %p134_p3 = scmp.eq.s32.totalorder %s2384_s20, 1  ;;  %p2385_p5 = scmp.ge.s32.totalorder %s2917_s18, 1 }
   0x9   : > { %p3008_p4 = por %p3377_p1, %p41_p0  ;;  %p141_p7 = scmp.lt.s32.totalorder %s2917_s18, 3 }
   0xa   : > { %p3013_p6 = por %p134_p3, %p41_p0  ;;  %s2919_s24 = smov [#allocation5]  }
   0xb   : > { %s3380_s21 = scalar_select %p3008_p4, 1, 0 }
   0xc   : > { %s3381_s22 = scalar_select %p3013_p6, 1, 0 }
   0xd   : > { %p3018_p8 = pnand %p2385_p5, %p141_p7  ;;  %s153_s25 = sshll.u32 %s2919_s24, 4  ;;  %s3022_s25 = int_to_ptr.vmem [resolvable:$true] %s153_s25 }
   0xe   : > { %s2920_s27 = smov [#allocation7]   ;;  %s2761_s5 = scalar_lea.hbm %s3373_s1, 512 }
   0xf   : > { %p2644_p9 = pneg %p3018_p8  ;;  %s166_s28 = sshll.u32 %s2920_s27, 4  ;;  %s3033_s28 = int_to_ptr.vmem [resolvable:$true] %s166_s28 }
  0x10   : > { %p2762_p12 = scmp.ne.s32.totalorder %s3373_s1, %s2761_s5  ;;  %p2768_p5 = scmp.lt.u32.totalorder %s2761_s5, %s3373_s1 }
  0x11   : > { %p3029_p11 = pnand %p2644_p9, %p3377_p1 }
  0x13   : > { %p2763_p13 = pneg %p3029_p11 }
  0x15   : > { %p2764_p0 = pnand %p2763_p13, %p2762_p12 }
  0x17   : > { %p2765_p3 = pneg %p2764_p0 }
  0x19   : > { %p2770_p7 = pnand %p2768_p5, %p2765_p3 }
  0x1b   : > { %2773 = shalt.err (!%p2770_p7)
}
  0x1c   : > { %s2774_s10 = scalar_lea.vmem %s3022_s25, 512  ;;  %p2782_p2 = scmp.lt.s32.totalorder %s3022_s25, %s3022_s25 }
  0x1d   : > { %p2775_p9 = scmp.ne.s32.totalorder %s3022_s25, %s2774_s10  ;;  %p2783_p12 = scmp.lt.s32.totalorder %s2774_s10, %s2774_s10 }
  0x1f   : > { %p2777_p10 = pnand %p2775_p9, %p2763_p13  ;;  %p2784_p0 = por %p2783_p12, %p2782_p2 }
  0x21   : > { %p2778_p1 = pneg %p2777_p10 }
  0x23   : > { %p2785_p6 = pnand %p2784_p0, %p2778_p1 }
  0x25   : > { %2788 = shalt.err (!%p2785_p6)
}
  0x26   : > { %s2921_s11 = smov 128   ;;  %s2922_s12 = smov 8  }
  0x27   : > { %2647 = dma.hbm_to_vmem [thread:$0]  (!%p3029_p11), %s3373_s1, 512, %s3022_s25, [#allocation6], %s2921_s11, %s2921_s11, %s2922_s12  }
  0x28   : > { %s2789_s27 = scalar_lea.hbm %s3374_s2, 512 }
  0x29   : > { %p2790_p2 = scmp.ne.s32.totalorder %s3374_s2, %s2789_s27  ;;  %p2796_p10 = scmp.lt.u32.totalorder %s2789_s27, %s3374_s2 }
  0x2b   : > { %p2792_p1 = pnand %p2790_p2, %p2763_p13 }
  0x2d   : > { %p2793_p6 = pneg %p2792_p1 }
  0x2f   : > { %p2798_p3 = pnand %p2796_p10, %p2793_p6 }
  0x31   : > { %2801 = shalt.err (!%p2798_p3)
}
  0x32   : > { %s2802_s25 = scalar_lea.vmem %s3033_s28, 512  ;;  %p2810_p12 = scmp.lt.s32.totalorder %s3033_s28, %s3033_s28 }
  0x33   : > { %p2803_p5 = scmp.ne.s32.totalorder %s3033_s28, %s2802_s25  ;;  %p2811_p0 = scmp.lt.s32.totalorder %s2802_s25, %s2802_s25 }
  0x35   : > { %p2805_p7 = pnand %p2803_p5, %p2763_p13  ;;  %p2812_p2 = por %p2811_p0, %p2810_p12 }
  0x37   : > { %p2806_p9 = pneg %p2805_p7 }
  0x39   : > { %p2813_p1 = pnand %p2812_p2, %p2806_p9 }
  0x3b   : > { %2816 = shalt.err (!%p2813_p1)
}
  0x3c   : > { %s2923_s7 = smov 64   ;;  %s2924_s8 = smov 4  }
  0x3d   : > { %2650 = dma.hbm_to_vmem [thread:$0]  (!%p3029_p11), %s3374_s2, 512, %s3033_s28, [#allocation6], %s2923_s7, %s2923_s7, %s2924_s8  }
  0x3e   : > { %s3088_s11 = sadd.s32 1, %s2917_s18   ;;  %s28_s13 = sadd.s32 1, %s2913_s17 }
  0x3f   : > { %s25_s12 = ssub.s32 %s2917_s18, %s3088_s11  ;;  %p35_p6 = scmp.ne.s32.totalorder %s2913_s17, %s2909_s16 }
  0x40   : > { %p26_p13 = scmp.eq.s32.totalorder %s25_s12, 0  ;;  %p36_p10 = scmp.eq.s32.totalorder %s2917_s18, 0 }
  0x41   : > { %p3384_p5 = scmp.eq.s32.totalorder %s2999_s19, 1  ;;  %p2661_p9 = scmp.lt.s32.totalorder %s2917_s18, 2 }
  0x42   : > { %s3097_s14 = scalar_select %p26_p13, %s2913_s17, %s28_s13  }
  0x43   : > { %p37_p3 = por %p36_p10, %p35_p6  ;;  %p3101_p7 = por %p3384_p5, %p35_p6 }
  0x44   : > { %s183_s26 = sand.u32 1, %s2913_s17   ;;  %s2390_s28 = sshll.u32 %s2917_s18, 7 }
  0x45   : > { %s3385_s20 = scalar_select %p3101_p7, 1, 0 }
  0x46   : > { %s2389_s24 = sshll.u32 %s183_s26, 3  ;;  %s3111_s30 = scalar_lea.hbm %s3372_s0, %s2390_s28 }
  0x47   : > { %s187_s5 = scalar_lea.vmem [#allocation2], %s2389_s24  ;;  %p3115_p11 = pnand %p2661_p9, %p37_p3 }
  0x48   : > { %s194_s6 = sshll.u32 %s187_s5, 4  ;;  %s184_s7 = scalar_lea.sflag [#allocation3], %s183_s26  ;;  %s3113_s6 = int_to_ptr.vmem [resolvable:$true] %s194_s6 }
  0x49   : > { %s2817_s8 = scalar_lea.hbm %s3111_s30, 128  ;;  %p2819_p0 = pneg %p3115_p11 }
  0x4a   : > { %p2818_p12 = scmp.ne.s32.totalorder %s3111_s30, %s2817_s8  ;;  %s2822_s12 = scalar_lea.hbm %s3372_s0, 256 }
  0x4b   : > { %p2823_p13 = scmp.lt.u32.totalorder %s3111_s30, %s3372_s0  ;;  %p2824_p6 = scmp.lt.u32.totalorder %s2822_s12, %s2817_s8 }
  0x4c   : > { %p2820_p2 = pnand %p2819_p0, %p2818_p12  ;;  %p2826_p3 = scmp.lt.u32.totalorder %s2817_s8, %s3111_s30 }
  0x4d   : > { %p2825_p10 = por %p2824_p6, %p2823_p13 }
  0x4e   : > { %p2821_p1 = pneg %p2820_p2 }
  0x4f   : > { %p2827_p5 = por %p2826_p3, %p2825_p10 }
  0x51   : > { %p2828_p9 = pnand %p2827_p5, %p2821_p1 }
  0x53   : > { %2831 = shalt.err (!%p2828_p9)
}
  0x54   : > { %s2832_s26 = scalar_lea.vmem %s3113_s6, 128  ;;  %s2925_s28 = smov [#allocation2]  }
  0x55   : > { %p2833_p12 = scmp.ne.s32.totalorder %s3113_s6, %s2832_s26  ;;  %s2837_s27 = sshll.u32 %s2925_s28, 4  ;;  %s2838_s27 = int_to_ptr.vmem [resolvable:$false] %s2837_s27 }
  0x56   : > { %s2839_s29 = scalar_lea.vmem %s2838_s27, 256  ;;  %p2840_p4 = scmp.lt.s32.totalorder %s3113_s6, %s2838_s27 }
  0x57   : > { %p2835_p2 = pnand %p2833_p12, %p2819_p0  ;;  %p2841_p13 = scmp.lt.s32.totalorder %s2839_s29, %s2832_s26 }
  0x59   : > { %p2836_p7 = pneg %p2835_p2  ;;  %p2842_p6 = por %p2841_p13, %p2840_p4 }
  0x5b   : > { %p2843_p10 = pnand %p2842_p6, %p2836_p7 }
  0x5d   : > { %2846 = shalt.err (!%p2843_p10)
}
  0x5e   : > { %2654 = dma.hbm_to_vmem [thread:$0]  (!%p3115_p11), %s3111_s30, 128, %s3113_s6, %s184_s7  }
  0x5f   : > { %203 = sbr.rel (%p3018_p8) target bundleno = 4810 (0x12ca), region = 36  ;;  %s3147_s5 = sand.u32 (!%p3018_p8), 1, %s2909_s16  }
  0x60   : > { %s2392_s8 = sshll.u32 (!%p3018_p8), %s3147_s5, 3  ;;  %s206_s9 = scalar_lea.sflag (!%p3018_p8), [#allocation3], %s3147_s5 }
  0x61   : > { %s209_s10 = scalar_lea.vmem (!%p3018_p8), [#allocation2], %s2392_s8  ;;  %p3387_p4 = scmp.ne.s32.totalorder (!%p3018_p8), %s3380_s21, 0 }
  0x66   : > { %2892 = dma.done.wait (%p3387_p4), %s206_s9, 128  }
  0x67   : > { %2894 = vsyncadd (%p3387_p4), %s206_s9, 4294967168  ;;  %p3388_p7 = scmp.eq.s32.totalorder %s2999_s19, 0 }
  0x69   : > { %2896 = dma.done.wait (%p3388_p7), [#allocation6], 1024   ;;  %p3389_p8 = pmov %p3388_p7 }
  0x6a   : > { %v2926_v0 = vmov 0.0|0.0   ;;  %vm2927_vm0 = vmmov 0   ;;  %v2928_v1 = vmov 0.0   ;;  %v243_v2 = vld [vmem:[#allocation5] sm:$0xff]  ;;  %v244_v3 = vld [vmem:[#allocation5 + $0x8] sm:$0xff]  ;;  %v245_v4 = vld [vmem:[#allocation5 + $0x10] sm:$0xff] }
  0x6b   : > { %2898 = vsyncadd (%p3389_p8), [#allocation6], 4294966272  ;;  %2626 = vmatprep.subr.bf16.mxu0 %v2926_v0  ;;  %2503 = vmatprep.mubr.msk.f32.mxu0 %vm2927_vm0, %v2928_v1  ;;  %v2627_v5 = vpack.c.bf16 %v244_v3, %v243_v2  ;;  %v246_v6 = vld [vmem:[#allocation5 + $0x18] sm:$0xff]  ;;  %vm247_vm1 = vcmask 261120   ;;  %s2929_s21 = smov 124   ;;  %s2930_s23 = smov 96  }
  0x6c   : > { %2506 = vmatprep.subr.mxu1 %v2928_v1  ;;  %2508 = vmatprep.mubr.msk.f32.mxu1 %vm2927_vm0, %v2928_v1  ;;  %v2630_v7 = vpack.c.bf16 %v246_v6, %v245_v4  ;;  %v242_v8 = vld [vmem:[%s209_s10] sm:$0xff]  ;;  %s2931_s30 = smov 92   ;;  %vm324_vm2 = vcmask 31744   ;;  %vm399_vm3 = vcmask 64512   ;;  %s2932_s6 = smov 60   ;;  %vm658_vm4 = vcmask 1043456  }
  0x6d   : > { %2628 = vmatpush3.bf16.msra.mxu0 %v2627_v5  ;;  %s2933_s25 = smov 64   ;;  %s2934_s7 = smov 88   ;;  %v654_v30 = vld [vmem:[#allocation7 + $0x4] sm:$0xf]  ;;  %v487_v39 = vld [vmem:[#allocation7] sm:$0xf] }
  0x6e   : > { %2629 = vmatprep.subr.bf16.mxu0 %v2926_v0  ;;  %s2935_s12 = smov 120   ;;  %s2936_s13 = smov 84   ;;  %v974_v2 = vld [vmem:[#allocation7 + $0x8] sm:$0xf] }
  0x6f   : > { %s2937_s24 = smov 116   ;;  %s2938_s26 = smov 56  }
  0x70   : > { %s2939_s28 = smov 52   ;;  %s2940_s27 = smov 112  }
  0x71   : > { %2631 = vmatpush3.bf16.msra.mxu0 %v2630_v7  ;;  %s2941_s29 = smov 80   ;;  %s2942_s9 = smov 76  }
  0x72   : > { %2516 = vmatprep.subr.mxu0 %v2928_v1  ;;  %s2943_s10 = smov 108   ;;  %p3390_p0 = scmp.ne.s32.totalorder %s3385_s20, 0 }
  0x74   : > { %2504 = vmatmul.mubr.msk.f32.vlgmr.msra.gmra.mrb[0].mxu0 %vm247_vm1, %v242_v8 }
  0x75   : > { %2518 = vmatprep.mubr.msk.f32.mxu0 %vm2927_vm0, %v2928_v1 }
 0x147   : > { %v3170_v9 = vpop.f32.mrb[0].mxu0 }
 0x148   : > { %488 = vrot.lane.b32.xlu1 %v3170_v9, %s2929_s21  ;;  %322 = vrot.lane.b32.xlu0 %v3170_v9, %s2930_s23  ;;  %v2505_v10 = vpop.f32.mrb[1].mxu0  ;;  %s2944_s21 = smov 48   ;;  %s2945_s23 = smov 44  }
 0x14c   : > { %490 = vrot.lane.b32.xlu0 %v3170_v9, %s2931_s30  ;;  %s2946_s30 = smov 104  }
 0x1ba   : > { %v323_v11 = vpop.permute.xlu0 %322  ;;  %v489_v13 = vpop.permute.xlu1 %488 }
 0x1bb   : > { %2507 = vmatpush3.xpose.msk.msra.mxu1 %vm324_vm2, %v323_v11 }
 0x1bc   : > { %2511 = vmatprep.subr.mxu1 %v2928_v1 }
 0x1be   : > { %2509 = vmatmul.mubr.msk.f32.vlgmr.msra.gmra.mrb[0].mxu1 %vm324_vm2, %v3170_v9  ;;  %v491_v12 = vpop.permute.xlu0 %490 }
 0x1bf   : > { %2517 = vmatpush3.xpose.msk.msra.mxu0 %vm324_vm2, %v491_v12  ;;  %2513 = vmatprep.mubr.msk.f32.mxu1 %vm2927_vm0, %v2928_v1 }
 0x1c0   : > { %2526 = vmatprep.subr.mxu0 %v2928_v1 }
 0x1c2   : > { %2519 = vmatmul.mubr.msk.f32.vlgmr.msra.gmra.mrb[2].mxu0 %vm324_vm2, %v489_v13 }
 0x1c3   : > { %2528 = vmatprep.mubr.msk.f32.mxu0 %vm2927_vm0, %v2928_v1  ;;  %2527 = vmatpush3.msk.msra.mxu0 %vm658_vm4, %v654_v30 }
 0x1c4   : > { %2536 = vmatprep.subr.mxu0 %v2928_v1 }
 0x291   : > { %v395_v14 = vpop.f32.mrb[0].mxu1 }
 0x292   : > { %v2510_v15 = vpop.f32.mrb[1].mxu1  ;;  %v400_v16 = vsel %vm399_vm3, %v395_v14, -inf }
 0x293   : > { %401 = vmax.xlane.f32.xlu1 %v400_v16 }
 0x295   : > { %v562_v17 = vpop.f32.mrb[2].mxu0 }
 0x296   : > { %v2520_v18 = vpop.f32.mrb[3].mxu0  ;;  %v566_v19 = vsel %vm399_vm3, %v562_v17, -inf }
 0x297   : > { %567 = vmax.xlane.f32.xlu0 %v566_v19 }
 0x320   : > { %v402_v20 = vpop.xlane.xlu1 %401 }
 0x321   : > { %v403_v21 = vsub.f32 %v395_v14, %v402_v20 }
 0x323   : > { %v404_v22 = vmul.f32 1.442695, %v403_v21 }
 0x324   : > { %v568_v23 = vpop.xlane.xlu0 %567 }
 0x325   : > { %2729 = vpow2.f32 %v404_v22  ;;  %v569_v24 = vsub.f32 %v562_v17, %v568_v23  ;;  %v1218_v23 = vld [vmem:[#allocation7 + $0xc] sm:$0xf] }
 0x327   : > { %v570_v25 = vmul.f32 1.442695, %v569_v24 }
 0x329   : > { %2731 = vpow2.f32 %v570_v25 }
 0x32f   : > { %v2730_v26 = vpop.eup %2729 }
 0x330   : > { %v406_v27 = vsel %vm399_vm3, %v2730_v26, 0.0 }
 0x331   : > { %407 = vadd.xlane.f32.xlu0 %v406_v27 }
 0x333   : > { %v2732_v28 = vpop.eup %2731 }
 0x334   : > { %v572_v29 = vsel %vm399_vm3, %v2732_v28, 0.0 }
 0x335   : > { %573 = vadd.xlane.f32.xlu1 %v572_v29 }
 0x346   : > { %577 = vrot.lane.b32.xlu1 %v3170_v9, %s2932_s6  ;;  %s2947_s6 = smov 72  }
 0x347   : > { %411 = vrot.lane.b32.xlu0 %v3170_v9, %s2933_s25  ;;  %s2948_s25 = smov 68  }
 0x34a   : > { %810 = vrot.lane.b32.xlu1 %v3170_v9, %s2934_s7  ;;  %s2949_s7 = smov 100  }
 0x34b   : > { %808 = vrot.lane.b32.xlu0 %v3170_v9, %s2935_s12  ;;  %s2950_s12 = smov 40  }
 0x3be   : > { %v408_v31 = vpop.xlane.xlu0 %407 }
 0x3bf   : > { %2733 = vrcp.f32 %v408_v31 }
 0x3c2   : > { %v574_v32 = vpop.xlane.xlu1 %573  ;;  %v412_v33 = vpop.permute.xlu0 %411 }
 0x3c3   : > { %2735 = vrcp.f32 %v574_v32  ;;  %2512 = vmatpush3.msra.mxu1 %v412_v33 }
 0x3c4   : > { %2521 = vmatprep.subr.mxu1 %v2928_v1 }
 0x3c6   : > { %v578_v36 = vpop.permute.xlu1 %577  ;;  %v809_v45 = vpop.permute.xlu0 %808 }
 0x3c9   : > { %v2734_v34 = vpop.eup %2733 }
 0x3ca   : > { %v410_v35 = vmul.f32 %v2734_v34, %v2730_v26  ;;  %v811_v43 = vpop.permute.xlu1 %810 }
 0x3cc   : > { %2514 = vmatmul.mubr.msk.f32.vlgmr.msra.gmra.mrb[2].mxu1 %vm399_vm3, %v410_v35 }
 0x3cd   : > { %v2736_v37 = vpop.eup %2735  ;;  %2522 = vmatpush3.msra.mxu1 %v578_v36  ;;  %2523 = vmatprep.mubr.msk.f32.mxu1 %vm2927_vm0, %v2928_v1 }
 0x3ce   : > { %v576_v38 = vmul.f32 %v2736_v37, %v2732_v28  ;;  %2531 = vmatprep.subr.mxu1 %v2928_v1 }
 0x3d0   : > { %2524 = vmatmul.mubr.msk.f32.vlgmr.msra.gmra.mrb[4].mxu1 %vm399_vm3, %v576_v38 }
 0x3d1   : > { %2533 = vmatprep.mubr.msk.f32.mxu1 %vm2927_vm0, %v2928_v1  ;;  %2532 = vmatpush3.msk.msra.mxu1 %vm658_vm4, %v487_v39 }
 0x3d2   : > { %2541 = vmatprep.subr.mxu1 %v2928_v1 }
 0x49f   : > { %v483_v40 = vpop.f32.mrb[2].mxu1 }
 0x4a0   : > { %v2515_v41 = vpop.f32.mrb[3].mxu1  ;;  %2534 = vmatmul.mubr.msk.f32.vlgmr.msra.gmra.mrb[6].mxu1 %vm324_vm2, %v483_v40 }
 0x4a1   : > { %2543 = vmatprep.mubr.msk.f32.mxu1 %vm2927_vm0, %v2928_v1 }
 0x4a3   : > { %v649_v42 = vpop.f32.mrb[4].mxu1 }
 0x4a4   : > { %v2525_v44 = vpop.f32.mrb[5].mxu1  ;;  %2529 = vmatmul.mubr.msk.f32.vlgmr.msra.gmra.mrb[4].mxu0 %vm324_vm2, %v649_v42 }
 0x4a5   : > { %2537 = vmatpush3.xpose.msk.msra.mxu0 %vm324_vm2, %v811_v43  ;;  %2538 = vmatprep.mubr.msk.f32.mxu0 %vm2927_vm0, %v2928_v1  ;;  %v1462_v43 = vld [vmem:[#allocation7 + $0x10] sm:$0xf] }
 0x4a6   : > { %2546 = vmatprep.subr.mxu0 %v2928_v1 }
 0x4a8   : > { %2539 = vmatmul.mubr.msk.f32.vlgmr.msra.gmra.mrb[6].mxu0 %vm324_vm2, %v809_v45 }
 0x4a9   : > { %2548 = vmatprep.mubr.msk.f32.mxu0 %vm2927_vm0, %v2928_v1  ;;  %2547 = vmatpush3.msk.msra.mxu0 %vm658_vm4, %v974_v2 }
 0x4aa   : > { %2556 = vmatprep.subr.mxu0 %v2928_v1 }
 0x573   : > { %v804_v46 = vpop.f32.mrb[6].mxu1 }
 0x574   : > { %v2535_v47 = vpop.f32.mrb[7].mxu1 }
 0x577   : > { %v728_v48 = vpop.f32.mrb[4].mxu0 }
 0x578   : > { %v805_v49 = vadd.f32 %v804_v46, %v728_v48  ;;  %v2530_v50 = vpop.f32.mrb[5].mxu0 }
 0x57b   : > { %v882_v51 = vpop.f32.mrb[6].mxu0 }
 0x57c   : > { %v2540_v52 = vpop.f32.mrb[7].mxu0  ;;  %v886_v53 = vsel %vm399_vm3, %v882_v51, -inf }
 0x57d   : > { %887 = vmax.xlane.f32.xlu1 %v886_v53 }
 0x58e   : > { %1054 = vrot.lane.b32.xlu1 %v3170_v9, %s2936_s13  ;;  %s2951_s13 = smov 36  }
 0x592   : > { %1052 = vrot.lane.b32.xlu1 %v3170_v9, %s2937_s24 }
 0x60a   : > { %v888_v54 = vpop.xlane.xlu1 %887 }
 0x60b   : > { %v889_v55 = vsub.f32 %v882_v51, %v888_v54 }
 0x60d   : > { %v890_v56 = vmul.f32 1.442695, %v889_v55 }
 0x60e   : > { %v1055_v62 = vpop.permute.xlu1 %1054 }
 0x60f   : > { %2737 = vpow2.f32 %v890_v56 }
 0x612   : > { %v1053_v0 = vpop.permute.xlu1 %1052 }
 0x619   : > { %v2738_v57 = vpop.eup %2737 }
 0x61a   : > { %v892_v58 = vsel %vm399_vm3, %v2738_v57, 0.0 }
 0x61b   : > { %893 = vadd.xlane.f32.xlu0 %v892_v58 }
 0x631   : > { %897 = vrot.lane.b32.xlu0 %v3170_v9, %s2938_s26 }
 0x6a8   : > { %v894_v59 = vpop.xlane.xlu0 %893 }
 0x6a9   : > { %2739 = vrcp.f32 %v894_v59 }
 0x6ac   : > { %v898_v60 = vpop.permute.xlu0 %897 }
 0x6ad   : > { %2542 = vmatpush3.msra.mxu1 %v898_v60 }
 0x6ae   : > { %2551 = vmatprep.subr.mxu1 %v2928_v1 }
 0x6b3   : > { %v2740_v61 = vpop.eup %2739 }
 0x6b4   : > { %v896_v63 = vmul.f32 %v2740_v61, %v2738_v57 }
 0x6b6   : > { %2544 = vmatmul.mubr.msk.f32.vlgmr.msra.gmra.mrb[8].mxu1 %vm399_vm3, %v896_v63  ;;  %v1706_v63 = vld [vmem:[#allocation7 + $0x14] sm:$0xf] }
 0x6b7   : > { %2552 = vmatpush3.xpose.msk.msra.mxu1 %vm324_vm2, %v1055_v62  ;;  %2553 = vmatprep.mubr.msk.f32.mxu1 %vm2927_vm0, %v2928_v1 }
 0x6b8   : > { %2561 = vmatprep.subr.mxu1 %v2928_v1 }
 0x6ba   : > { %2554 = vmatmul.mubr.msk.f32.vlgmr.msra.gmra.mrb[10].mxu1 %vm324_vm2, %v1053_v0 }
 0x6bb   : > { %2563 = vmatprep.mubr.msk.f32.mxu1 %vm2927_vm0, %v2928_v1  ;;  %2562 = vmatpush3.msk.msra.mxu1 %vm658_vm4, %v1218_v23 }
 0x6bc   : > { %2571 = vmatprep.subr.mxu1 %v2928_v1 }
 0x789   : > { %v969_v3 = vpop.f32.mrb[8].mxu1 }
 0x78a   : > { %v2545_v4 = vpop.f32.mrb[9].mxu1  ;;  %2549 = vmatmul.mubr.msk.f32.vlgmr.msra.gmra.mrb[8].mxu0 %vm324_vm2, %v969_v3 }
 0x78b   : > { %2558 = vmatprep.mubr.msk.f32.mxu0 %vm2927_vm0, %v2928_v1 }
 0x78d   : > { %v1126_v5 = vpop.f32.mrb[10].mxu1 }
 0x78e   : > { %v2555_v6 = vpop.f32.mrb[11].mxu1  ;;  %v1130_v7 = vsel %vm399_vm3, %v1126_v5, -inf }
 0x78f   : > { %1131 = vmax.xlane.f32.xlu0 %v1130_v7 }
 0x7a5   : > { %1141 = vrot.lane.b32.xlu0 %v3170_v9, %s2939_s28  ;;  %s2439_s28 = sshll.u32 %s2999_s19, 7 }
 0x7a9   : > { %1296 = vrot.lane.b32.xlu0 %v3170_v9, %s2940_s27  ;;  %s241_s27 = scalar_lea.vmem [#allocation8], %s2392_s8  ;;  %s2952_s8 = smov [#allocation8]  }
 0x81c   : > { %v1132_v8 = vpop.xlane.xlu0 %1131 }
 0x81d   : > { %v1133_v10 = vsub.f32 %v1126_v5, %v1132_v8 }
 0x81f   : > { %v1134_v11 = vmul.f32 1.442695, %v1133_v10 }
 0x820   : > { %v1142_v12 = vpop.permute.xlu0 %1141 }
 0x821   : > { %2741 = vpow2.f32 %v1134_v11  ;;  %2557 = vmatpush3.msra.mxu0 %v1142_v12 }
 0x822   : > { %2566 = vmatprep.subr.mxu0 %v2928_v1 }
 0x824   : > { %v1297_v22 = vpop.permute.xlu0 %1296 }
 0x82b   : > { %v2742_v13 = vpop.eup %2741 }
 0x82c   : > { %v1136_v14 = vsel %vm399_vm3, %v2742_v13, 0.0 }
 0x82d   : > { %1137 = vadd.xlane.f32.xlu1 %v1136_v14 }
 0x83e   : > { %1298 = vrot.lane.b32.xlu1 %v3170_v9, %s2941_s29  ;;  %s2295_s29 = sshll.u32 %s241_s27, 4  ;;  %s3329_s29 = int_to_ptr.vmem [resolvable:$true] %s2295_s29 }
 0x83f   : > { %s2847_s19 = scalar_lea.vmem %s3329_s29, 128 }
 0x840   : > { %p2848_p11 = scmp.ne.s32.totalorder %s3329_s29, %s2847_s19 }
 0x842   : > { %p2849_p1 = pnand %p2848_p11, %p3390_p0 }
 0x844   : > { %p2850_p3 = pneg %p2849_p1 }
 0x85d   : > { %v1047_v15 = vpop.f32.mrb[8].mxu0 }
 0x85e   : > { %v1051_v16 = vadd.f32 %v1047_v15, %v805_v49  ;;  %v2550_v17 = vpop.f32.mrb[9].mxu0 }
 0x8ba   : > { %v1138_v18 = vpop.xlane.xlu1 %1137 }
 0x8bb   : > { %2743 = vrcp.f32 %v1138_v18 }
 0x8be   : > { %v1299_v21 = vpop.permute.xlu1 %1298 }
 0x8c5   : > { %v2744_v19 = vpop.eup %2743 }
 0x8c6   : > { %v1140_v20 = vmul.f32 %v2744_v19, %v2742_v13 }
 0x8c8   : > { %2559 = vmatmul.mubr.msk.f32.vlgmr.msra.gmra.mrb[10].mxu0 %vm399_vm3, %v1140_v20 }
 0x8c9   : > { %2567 = vmatpush3.xpose.msk.msra.mxu0 %vm324_vm2, %v1299_v21  ;;  %2568 = vmatprep.mubr.msk.f32.mxu0 %vm2927_vm0, %v2928_v1  ;;  %v1950_v21 = vld [vmem:[#allocation7 + $0x18] sm:$0xf] }
 0x8ca   : > { %2576 = vmatprep.subr.mxu0 %v2928_v1 }
 0x8cc   : > { %2569 = vmatmul.mubr.msk.f32.vlgmr.msra.gmra.mrb[12].mxu0 %vm324_vm2, %v1297_v22 }
 0x8cd   : > { %2578 = vmatprep.mubr.msk.f32.mxu0 %vm2927_vm0, %v2928_v1  ;;  %2577 = vmatpush3.msk.msra.mxu0 %vm658_vm4, %v1462_v43 }
 0x8ce   : > { %2586 = vmatprep.subr.mxu0 %v2928_v1 }
 0x99b   : > { %v1213_v24 = vpop.f32.mrb[10].mxu0 }
 0x99c   : > { %v2560_v25 = vpop.f32.mrb[11].mxu0  ;;  %2564 = vmatmul.mubr.msk.f32.vlgmr.msra.gmra.mrb[12].mxu1 %vm324_vm2, %v1213_v24 }
 0x99d   : > { %2573 = vmatprep.mubr.msk.f32.mxu1 %vm2927_vm0, %v2928_v1 }
 0x99f   : > { %v1370_v26 = vpop.f32.mrb[12].mxu0 }
 0x9a0   : > { %v2570_v27 = vpop.f32.mrb[13].mxu0  ;;  %v1374_v28 = vsel %vm399_vm3, %v1370_v26, -inf }
 0x9a1   : > { %1375 = vmax.xlane.f32.xlu1 %v1374_v28 }
 0x9b2   : > { %1542 = vrot.lane.b32.xlu1 %v3170_v9, %s2942_s9 }
 0x9b6   : > { %1540 = vrot.lane.b32.xlu1 %v3170_v9, %s2943_s10 }
 0xa2e   : > { %v1376_v29 = vpop.xlane.xlu1 %1375 }
 0xa2f   : > { %v1377_v30 = vsub.f32 %v1370_v26, %v1376_v29 }
 0xa31   : > { %v1378_v31 = vmul.f32 1.442695, %v1377_v30 }
 0xa32   : > { %v1543_v40 = vpop.permute.xlu1 %1542 }
 0xa33   : > { %2745 = vpow2.f32 %v1378_v31 }
 0xa36   : > { %v1541_v42 = vpop.permute.xlu1 %1540 }
 0xa3d   : > { %v2746_v32 = vpop.eup %2745 }
 0xa3e   : > { %v1380_v33 = vsel %vm399_vm3, %v2746_v32, 0.0 }
 0xa3f   : > { %1381 = vadd.xlane.f32.xlu0 %v1380_v33 }
 0xa55   : > { %1385 = vrot.lane.b32.xlu0 %v3170_v9, %s2944_s21  ;;  %s3327_s21 = scalar_lea.hbm %s3376_s4, %s2439_s28 }
 0xa6f   : > { %v1291_v34 = vpop.f32.mrb[12].mxu1 }
 0xa70   : > { %v1295_v35 = vadd.f32 %v1291_v34, %v1051_v16  ;;  %v2565_v36 = vpop.f32.mrb[13].mxu1 }
 0xacc   : > { %v1382_v37 = vpop.xlane.xlu0 %1381 }
 0xacd   : > { %2747 = vrcp.f32 %v1382_v37 }
 0xad0   : > { %v1386_v38 = vpop.permute.xlu0 %1385 }
 0xad1   : > { %2572 = vmatpush3.msra.mxu1 %v1386_v38 }
 0xad2   : > { %2581 = vmatprep.subr.mxu1 %v2928_v1 }
 0xad7   : > { %v2748_v39 = vpop.eup %2747 }
 0xad8   : > { %v1384_v41 = vmul.f32 %v2748_v39, %v2746_v32 }
 0xada   : > { %2574 = vmatmul.mubr.msk.f32.vlgmr.msra.gmra.mrb[14].mxu1 %vm399_vm3, %v1384_v41  ;;  %v2437_v41 = vld [vmem:[%s3375_s3] ss:$0 sm:$0xff] }
 0xadb   : > { %2582 = vmatpush3.xpose.msk.msra.mxu1 %vm324_vm2, %v1543_v40  ;;  %2583 = vmatprep.mubr.msk.f32.mxu1 %vm2927_vm0, %v2928_v1 }
 0xadc   : > { %2591 = vmatprep.subr.mxu1 %v2928_v1 }
 0xade   : > { %2584 = vmatmul.mubr.msk.f32.vlgmr.msra.gmra.mrb[16].mxu1 %vm324_vm2, %v1541_v42 }
 0xadf   : > { %2593 = vmatprep.mubr.msk.f32.mxu1 %vm2927_vm0, %v2928_v1  ;;  %2592 = vmatpush3.msk.msra.mxu1 %vm658_vm4, %v1706_v63 }
 0xae0   : > { %2601 = vmatprep.subr.mxu1 %v2928_v1 }
 0xbad   : > { %v1457_v44 = vpop.f32.mrb[14].mxu1 }
 0xbae   : > { %v2575_v45 = vpop.f32.mrb[15].mxu1  ;;  %2579 = vmatmul.mubr.msk.f32.vlgmr.msra.gmra.mrb[14].mxu0 %vm324_vm2, %v1457_v44 }
 0xbaf   : > { %2588 = vmatprep.mubr.msk.f32.mxu0 %vm2927_vm0, %v2928_v1 }
 0xbb1   : > { %v1614_v46 = vpop.f32.mrb[16].mxu1 }
 0xbb2   : > { %v2585_v47 = vpop.f32.mrb[17].mxu1  ;;  %v1618_v48 = vsel %vm399_vm3, %v1614_v46, -inf }
 0xbb3   : > { %1619 = vmax.xlane.f32.xlu0 %v1618_v48 }
 0xbc9   : > { %1629 = vrot.lane.b32.xlu0 %v3170_v9, %s2945_s23  ;;  %s2282_s23 = scalar_lea.sflag [#allocation4], %s3147_s5 }
 0xbcd   : > { %1784 = vrot.lane.b32.xlu0 %v3170_v9, %s2946_s30  ;;  %s2851_s30 = sshll.u32 %s2952_s8, 4  ;;  %s2852_s30 = int_to_ptr.vmem [resolvable:$false] %s2851_s30 }
 0xbce   : > { %p2854_p5 = scmp.lt.s32.totalorder %s3329_s29, %s2852_s30 }
 0xc40   : > { %v1620_v49 = vpop.xlane.xlu0 %1619 }
 0xc41   : > { %v1621_v50 = vsub.f32 %v1614_v46, %v1620_v49 }
 0xc43   : > { %v1622_v51 = vmul.f32 1.442695, %v1621_v50 }
 0xc44   : > { %v1630_v52 = vpop.permute.xlu0 %1629 }
 0xc45   : > { %2749 = vpow2.f32 %v1622_v51  ;;  %2587 = vmatpush3.msra.mxu0 %v1630_v52 }
 0xc46   : > { %2596 = vmatprep.subr.mxu0 %v2928_v1 }
 0xc48   : > { %v1785_v62 = vpop.permute.xlu0 %1784 }
 0xc4f   : > { %v2750_v53 = vpop.eup %2749 }
 0xc50   : > { %v1624_v54 = vsel %vm399_vm3, %v2750_v53, 0.0 }
 0xc51   : > { %1625 = vadd.xlane.f32.xlu1 %v1624_v54 }
 0xc62   : > { %1786 = vrot.lane.b32.xlu1 %v3170_v9, %s2947_s6  ;;  %s2853_s6 = scalar_lea.vmem %s2852_s30, 256 }
 0xc63   : > { %p2855_p9 = scmp.lt.s32.totalorder %s2853_s6, %s2847_s19 }
 0xc65   : > { %p2856_p12 = por %p2855_p9, %p2854_p5 }
 0xc67   : > { %p2857_p2 = pnand %p2856_p12, %p2850_p3 }
 0xc81   : > { %v1535_v55 = vpop.f32.mrb[14].mxu0 }
 0xc82   : > { %v1539_v56 = vadd.f32 %v1535_v55, %v1295_v35  ;;  %v2580_v57 = vpop.f32.mrb[15].mxu0 }
 0xcde   : > { %v1626_v58 = vpop.xlane.xlu1 %1625 }
 0xcdf   : > { %2751 = vrcp.f32 %v1626_v58 }
 0xce2   : > { %v1787_v61 = vpop.permute.xlu1 %1786 }
 0xce9   : > { %v2752_v59 = vpop.eup %2751 }
 0xcea   : > { %v1628_v60 = vmul.f32 %v2752_v59, %v2750_v53 }
 0xcec   : > { %2589 = vmatmul.mubr.msk.f32.vlgmr.msra.gmra.mrb[16].mxu0 %vm399_vm3, %v1628_v60 }
 0xced   : > { %2597 = vmatpush3.xpose.msk.msra.mxu0 %vm324_vm2, %v1787_v61  ;;  %2598 = vmatprep.mubr.msk.f32.mxu0 %vm2927_vm0, %v2928_v1 }
 0xcee   : > { %2606 = vmatprep.subr.mxu0 %v2928_v1 }
 0xcf0   : > { %2599 = vmatmul.mubr.msk.f32.vlgmr.msra.gmra.mrb[18].mxu0 %vm324_vm2, %v1785_v62 }
 0xcf1   : > { %2608 = vmatprep.mubr.msk.f32.mxu0 %vm2927_vm0, %v2928_v1  ;;  %2607 = vmatpush3.msk.msra.mxu0 %vm658_vm4, %v1950_v21 }
 0xcf2   : > { %2616 = vmatprep.subr.mxu0 %v2928_v1 }
 0xdbf   : > { %v1701_v0 = vpop.f32.mrb[16].mxu0 }
 0xdc0   : > { %v2590_v2 = vpop.f32.mrb[17].mxu0  ;;  %2594 = vmatmul.mubr.msk.f32.vlgmr.msra.gmra.mrb[18].mxu1 %vm324_vm2, %v1701_v0 }
 0xdc1   : > { %2603 = vmatprep.mubr.msk.f32.mxu1 %vm2927_vm0, %v2928_v1 }
 0xdc3   : > { %v1858_v3 = vpop.f32.mrb[18].mxu0 }
 0xdc4   : > { %v2600_v4 = vpop.f32.mrb[19].mxu0  ;;  %v1862_v5 = vsel %vm399_vm3, %v1858_v3, -inf }
 0xdc5   : > { %1863 = vmax.xlane.f32.xlu1 %v1862_v5 }
 0xdd6   : > { %2030 = vrot.lane.b32.xlu1 %v3170_v9, %s2948_s25 }
 0xdda   : > { %2028 = vrot.lane.b32.xlu1 %v3170_v9, %s2949_s7 }
 0xe52   : > { %v1864_v6 = vpop.xlane.xlu1 %1863 }
 0xe53   : > { %v1865_v7 = vsub.f32 %v1858_v3, %v1864_v6 }
 0xe55   : > { %v1866_v8 = vmul.f32 1.442695, %v1865_v7 }
 0xe56   : > { %v2031_v18 = vpop.permute.xlu1 %2030 }
 0xe57   : > { %2753 = vpow2.f32 %v1866_v8 }
 0xe5a   : > { %v2029_v20 = vpop.permute.xlu1 %2028 }
 0xe61   : > { %v2754_v10 = vpop.eup %2753 }
 0xe62   : > { %v1868_v11 = vsel %vm399_vm3, %v2754_v10, 0.0 }
 0xe63   : > { %1869 = vadd.xlane.f32.xlu0 %v1868_v11 }
 0xe79   : > { %1873 = vrot.lane.b32.xlu0 %v3170_v9, %s2950_s12 }
 0xe93   : > { %v1779_v12 = vpop.f32.mrb[18].mxu1 }
 0xe94   : > { %v1783_v13 = vadd.f32 %v1779_v12, %v1539_v56  ;;  %v2595_v14 = vpop.f32.mrb[19].mxu1 }
 0xef0   : > { %v1870_v15 = vpop.xlane.xlu0 %1869 }
 0xef1   : > { %2755 = vrcp.f32 %v1870_v15 }
 0xef4   : > { %v1874_v16 = vpop.permute.xlu0 %1873 }
 0xef5   : > { %2602 = vmatpush3.msra.mxu1 %v1874_v16 }
 0xef6   : > { %2611 = vmatprep.subr.mxu1 %v2928_v1 }
 0xefb   : > { %v2756_v17 = vpop.eup %2755 }
 0xefc   : > { %v1872_v19 = vmul.f32 %v2756_v17, %v2754_v10 }
 0xefe   : > { %2604 = vmatmul.mubr.msk.f32.vlgmr.msra.gmra.mrb[20].mxu1 %vm399_vm3, %v1872_v19 }
 0xeff   : > { %2612 = vmatpush3.xpose.msk.msra.mxu1 %vm324_vm2, %v2031_v18  ;;  %2613 = vmatprep.mubr.msk.f32.mxu1 %vm2927_vm0, %v2928_v1 }
 0xf00   : > { %2621 = vmatprep.subr.mxu1 %v2928_v1 }
 0xf02   : > { %2614 = vmatmul.mubr.msk.f32.vlgmr.msra.gmra.mrb[22].mxu1 %vm324_vm2, %v2029_v20 }
 0xf03   : > { %2623 = vmatprep.mubr.msk.f32.mxu1 %vm2927_vm0, %v2928_v1 }
 0xfd1   : > { %v1945_v22 = vpop.f32.mrb[20].mxu1 }
 0xfd2   : > { %v2605_v23 = vpop.f32.mrb[21].mxu1  ;;  %2609 = vmatmul.mubr.msk.f32.vlgmr.msra.gmra.mrb[20].mxu0 %vm324_vm2, %v1945_v22 }
 0xfd3   : > { %2618 = vmatprep.mubr.msk.f32.mxu0 %vm2927_vm0, %v2928_v1  ;;  %v2194_v1 = vld [vmem:[#allocation7 + $0x1c] sm:$0xf] }
 0xfd4   : > { %2622 = vmatpush3.msk.msra.mxu1 %vm658_vm4, %v2194_v1 }
 0xfd5   : > { %v2102_v24 = vpop.f32.mrb[22].mxu1 }
 0xfd6   : > { %v2615_v25 = vpop.f32.mrb[23].mxu1  ;;  %v2106_v26 = vsel %vm399_vm3, %v2102_v24, -inf }
 0xfd7   : > { %2107 = vmax.xlane.f32.xlu0 %v2106_v26 }
 0xfed   : > { %2117 = vrot.lane.b32.xlu0 %v3170_v9, %s2951_s13 }
0x1064   : > { %v2108_v27 = vpop.xlane.xlu0 %2107 }
0x1065   : > { %v2109_v28 = vsub.f32 %v2102_v24, %v2108_v27 }
0x1067   : > { %v2110_v29 = vmul.f32 1.442695, %v2109_v28 }
0x1068   : > { %v2118_v30 = vpop.permute.xlu0 %2117 }
0x1069   : > { %2757 = vpow2.f32 %v2110_v29  ;;  %2617 = vmatpush3.msra.mxu0 %v2118_v30 }
0x1073   : > { %v2758_v31 = vpop.eup %2757 }
0x1074   : > { %v2112_v32 = vsel %vm399_vm3, %v2758_v31, 0.0 }
0x1075   : > { %2113 = vadd.xlane.f32.xlu1 %v2112_v32 }
0x10a5   : > { %v2023_v33 = vpop.f32.mrb[20].mxu0 }
0x10a6   : > { %v2027_v34 = vadd.f32 %v2023_v33, %v1783_v13  ;;  %v2610_v35 = vpop.f32.mrb[21].mxu0 }
0x1102   : > { %v2114_v36 = vpop.xlane.xlu1 %2113 }
0x1103   : > { %2759 = vrcp.f32 %v2114_v36 }
0x110d   : > { %v2760_v9 = vpop.eup %2759 }
0x110e   : > { %v2116_v37 = vmul.f32 %v2760_v9, %v2758_v31 }
0x1110   : > { %2619 = vmatmul.mubr.msk.f32.vlgmr.msra.gmra.mrb[22].mxu0 %vm399_vm3, %v2116_v37 }
0x11e3   : > { %v2189_v38 = vpop.f32.mrb[22].mxu0 }
0x11e4   : > { %v2620_v39 = vpop.f32.mrb[23].mxu0  ;;  %2624 = vmatmul.mubr.msk.f32.vlgmr.msra.gmra.mrb[24].mxu1 %vm324_vm2, %v2189_v38 }
0x12b7   : > { %v2267_v40 = vpop.f32.mrb[24].mxu1 }
0x12b8   : > { %v2271_v42 = vadd.f32 %v2267_v40, %v2027_v34  ;;  %v2625_v43 = vpop.f32.mrb[25].mxu1 }
0x12ba   : > { %v2279_v44 = vadd.f32 %v2437_v41, %v2271_v42 }
0x12bc   : > { %2280 = vst.msk [vmem:[%s241_s27] sm:$0xff] %vm247_vm1, %v2279_v44 }
0x12bd   : > { %2860 = shalt.err (!%p2857_p2)
}
0x12be   : > { %s2861_s5 = scalar_lea.hbm %s3327_s21, 128  ;;  %s2865_s12 = scalar_lea.hbm %s3376_s4, 256 }
0x12bf   : > { %p2862_p13 = scmp.ne.s32.totalorder %s3327_s21, %s2861_s5  ;;  %p2866_p4 = scmp.lt.u32.totalorder %s3327_s21, %s3376_s4 }
0x12c0   : > { %p2867_p7 = scmp.lt.u32.totalorder %s2865_s12, %s2861_s5  ;;  %p2869_p11 = scmp.lt.u32.totalorder %s2861_s5, %s3327_s21 }
0x12c1   : > { %p2863_p6 = pnand %p2862_p13, %p3390_p0 }
0x12c2   : > { %p2868_p8 = por %p2867_p7, %p2866_p4 }
0x12c3   : > { %p2864_p10 = pneg %p2863_p6 }
0x12c4   : > { %p2870_p1 = por %p2869_p11, %p2868_p8 }
0x12c6   : > { %p2871_p3 = pnand %p2870_p1, %p2864_p10 }
0x12c8   : > { %2874 = shalt.err (!%p2871_p3)
}
0x12c9   : > { %2642 = dma.vmem_to_hbm [thread:$0]  (%p3390_p0), %s3329_s29, 128, %s3327_s21, %s2282_s23  }
0x12ca PF: > { %s2307_s26 = sand.u32 1, %s2905_s15   ;;  %p3391_p5 = scmp.ne.s32.totalorder %s3381_s22, 0 }
0x12cb   : > { %p3392_p9 = scmp.ge.s32.totalorder %s2917_s18, 2  ;;  %s2308_s28 = scalar_lea.sflag [#allocation4], %s2307_s26 }
0x12cd   : > { %p2656_p12 = pnand %p3392_p9, %p3391_p5 }
0x12cf   : > { %2900 = dma.done.wait (!%p2656_p12), %s2308_s28, 128  }
0x12d0   : > { %2902 = vsyncadd (!%p2656_p12), %s2308_s28, 4294967168  ;;  %p18_p2 = scmp.ge.s32.totalorder %s3088_s11, 4   ;;  %s3393_s15 = smov %s2909_s16 }
0x12d1   : > { %s3394_s16 = smov %s2913_s17  ;;  %s3395_s17 = smov %s3097_s14 }
0x12d2   : > { %s3396_s18 = smov %s3088_s11  ;;  %20 = sbr.rel (!%p18_p2) target bundleno = 6 (0x6), region = 96 }
0x12d9   :  { %2313 = vsyncpa [#allocation3], 1 }
0x12da   :  { %2315 = vsyncpa [#allocation3 + $0x1], 1 }
0x12db   :  { %2316 = vsyncpa [#allocation6], 1 }
0x12dc   :  { %2317 = vsyncpa [#allocation4], 1 }
0x12dd   :  { %2319 = vsyncpa [#allocation4 + $0x1], 1 }

</bundles_post_ra>
